<compile_context>
chip_gen: v5e
topology: v5e:2x2
jax: 0.10.0
libtpu: 0.0.40
codegen_flags: <defaults>
</compile_context>

<pallas_src>
import functools

import jax
import jax.numpy as jnp
from jax.experimental import pallas as pl
from jax.experimental.pallas import tpu as pltpu

# Layer widths of the PyTorch module.
FEATURES_IN = 20
FEATURES_OUT = 7
LANE = 128
LAYER_DIMS = [FEATURES_IN, 1024, 512, 256, 128, 64, 32, 16, FEATURES_OUT]
NUM_LAYERS = len(LAYER_DIMS) - 1  # 8 Linear layers
# Widths as seen inside the kernel: every hidden/output width below 128 is padded to 128 lanes.
KERNEL_DIMS = [FEATURES_IN] + [max(d, LANE) for d in LAYER_DIMS[1:]]
BIAS_TOTAL = sum(KERNEL_DIMS[1:])  # 2432, all per-layer offsets are multiples of 128


def _round_up(x, m):
    return (x + m - 1) // m * m


def _const_block_spec(shape):
    """BlockSpec for a grid-invariant (resident) input; single-buffered when supported."""
    try:
        return pl.BlockSpec(shape, lambda i: (0, 0), pipeline_mode=pl.Buffered(1))
    except TypeError:  # older jax without pipeline_mode kwarg
        return pl.BlockSpec(shape, lambda i: (0, 0))


def _mlp_kernel(x_ref, *refs):
    """refs = (w0, ..., w7, bias_cat, out). One batch tile, all 8 layers fused."""
    out_ref = refs[-1]
    bias_ref = refs[-2]
    w_refs = refs[:-2]

    h = x_ref[...]  # (bt, 20) f32
    off = 0
    for layer in range(NUM_LAYERS):
        dout = KERNEL_DIMS[layer + 1]
        w = w_refs[layer][...]                     # [din, dout] bf16 -> MXU operand
        b = bias_ref[:, off:off + dout]            # (1, dout) f32, static lane-aligned slice
        h = jnp.dot(h.astype(jnp.bfloat16), w,
                    preferred_element_type=jnp.float32) + b
        if layer < NUM_LAYERS - 1:
            h = jnp.maximum(h, 0.0)                # ReLU in f32 on the VPU
        off += dout
    out_ref[...] = h                               # lane-dense (bt, 128) unmasked store


@functools.partial(jax.jit, static_argnames=("batch_tile",))
def neural_network_forward(x, params, *, batch_tile=512):
    """x: [B, 20] f32; params: flat list [w0, b0, ..., w7, b7] (w: [in,out] f32, b: [1,out] f32)."""
    B, fin = x.shape
    assert fin == FEATURES_IN

    # --- batch tiling -------------------------------------------------------
    bt = min(batch_tile, _round_up(B, 8))
    bt = max(8, _round_up(bt, 8))
    # v7x megacore: keep >= 2 grid steps for non-trivial batches so both TCs get work.
    if bt >= B and B >= 16:
        bt = _round_up((B + 1) // 2, 8)
    B_pad = _round_up(B, bt)
    grid = (B_pad // bt,)

    x_pad = jnp.pad(x, ((0, B_pad - B), (0, 0))) if B_pad != B else x

    # --- parameter prep: pad narrow dims to 128 lanes, weights -> bf16, biases -> one array ----
    w_list, b_list = [], []
    for layer in range(NUM_LAYERS):
        din, dout = LAYER_DIMS[layer], LAYER_DIMS[layer + 1]
        kdin, kdout = KERNEL_DIMS[layer], KERNEL_DIMS[layer + 1]
        w = params[2 * layer]
        b = params[2 * layer + 1]
        if (kdin, kdout) != (din, dout):
            w = jnp.pad(w, ((0, kdin - din), (0, kdout - dout)))
            b = jnp.pad(b, ((0, 0), (0, kdout - dout)))
        w_list.append(w.astype(jnp.bfloat16))
        b_list.append(b.astype(jnp.float32))
    bias_cat = jnp.concatenate(b_list, axis=1)     # (1, 2432) f32

    # --- specs --------------------------------------------------------------
    in_specs = [pl.BlockSpec((bt, FEATURES_IN), lambda i: (i, 0))]
    for layer in range(NUM_LAYERS):
        in_specs.append(_const_block_spec((KERNEL_DIMS[layer], KERNEL_DIMS[layer + 1])))
    in_specs.append(_const_block_spec((1, BIAS_TOTAL)))
    out_spec = pl.BlockSpec((bt, LANE), lambda i: (i, 0))

    # Advisory cost hint so XLA schedules around the custom call.
    flops = 2 * B_pad * sum(KERNEL_DIMS[l] * KERNEL_DIMS[l + 1] for l in range(NUM_LAYERS))
    bytes_accessed = (2 * sum(KERNEL_DIMS[l] * KERNEL_DIMS[l + 1] for l in range(NUM_LAYERS))
                      + 4 * BIAS_TOTAL
                      + 4 * B_pad * (FEATURES_IN + LANE))

    out_padded = pl.pallas_call(
        _mlp_kernel,
        out_shape=jax.ShapeDtypeStruct((B_pad, LANE), jnp.float32),
        grid_spec=pltpu.PrefetchScalarGridSpec(
            num_scalar_prefetch=0,
            grid=grid,
            in_specs=in_specs,
            out_specs=out_spec,
        ),
        compiler_params=pltpu.CompilerParams(
            dimension_semantics=("parallel",),
            vmem_limit_bytes=48 * 1024 * 1024,
        ),
        cost_estimate=pl.CostEstimate(
            flops=flops, transcendentals=0, bytes_accessed=bytes_accessed),
    )(x_pad, *w_list, bias_cat)

    return out_padded[:B, :FEATURES_OUT]


def init_params(key):
    """PyTorch Linear default init: U(-1/sqrt(fan_in), +1/sqrt(fan_in)).

    Weights returned as [in_features, out_features] (== W_pt.T); biases as [1, out_features].
    """
    params = []
    for layer in range(NUM_LAYERS):
        din, dout = LAYER_DIMS[layer], LAYER_DIMS[layer + 1]
        key, kw, kb = jax.random.split(key, 3)
        bound = 1.0 / jnp.sqrt(jnp.float32(din))
        w = jax.random.uniform(kw, (din, dout), jnp.float32, -bound, bound)
        b = jax.random.uniform(kb, (1, dout), jnp.float32, -bound, bound)
        params += [w, b]
    return params


def reference_forward_bf16(x, params):
    """Pure-JAX reference matching the kernel math (bf16 operands, f32 accumulation)."""
    h = x
    for layer in range(NUM_LAYERS):
        w, b = params[2 * layer], params[2 * layer + 1]
        h = jnp.dot(h.astype(jnp.bfloat16), w.astype(jnp.bfloat16),
                    preferred_element_type=jnp.float32) + b
        if layer < NUM_LAYERS - 1:
            h = jnp.maximum(h, 0.0)
    return h


def reference_forward_f32(x, params):
    """Full-precision reference of the original module's forward semantics."""
    h = x
    for layer in range(NUM_LAYERS):
        w, b = params[2 * layer], params[2 * layer + 1]
        h = jnp.dot(h, w, precision=jax.lax.Precision.HIGHEST) + b
        if layer < NUM_LAYERS - 1:
            h = jnp.maximum(h, 0.0)
    return h


if __name__ == "__main__":
    key = jax.random.PRNGKey(0)
    key, kx1, kx2 = jax.random.split(key, 3)
    params = init_params(key)

    # Small shape consistent with the module's forward: [batch, 20].
    x_small = jax.random.normal(kx1, (8, FEATURES_IN), jnp.float32)
    out_small = jax.block_until_ready(neural_network_forward(x_small, params))
    assert out_small.shape == (8, FEATURES_OUT)
    assert jnp.allclose(out_small, reference_forward_bf16(x_small, params),
                        atol=1e-2, rtol=1e-2), "mismatch vs bf16 reference (small batch)"
    assert jnp.allclose(out_small, reference_forward_f32(x_small, params),
                        atol=5e-2, rtol=5e-2), "mismatch vs f32 reference (small batch)"

    # Non-multiple batch exercising padding, multi-step grid and the 2-step split path.
    x_big = jax.random.normal(kx2, (300, FEATURES_IN), jnp.float32)
    out_big = jax.block_until_ready(neural_network_forward(x_big, params, batch_tile=128))
    assert out_big.shape == (300, FEATURES_OUT)
    assert jnp.allclose(out_big, reference_forward_bf16(x_big, params),
                        atol=1e-2, rtol=1e-2), "mismatch vs bf16 reference (padded batch)"

    # Default large tile (bt would swallow the batch -> forced into 2 grid steps for v7x).
    out_big2 = jax.block_until_ready(neural_network_forward(x_big, params))
    assert jnp.allclose(out_big2, reference_forward_bf16(x_big, params),
                        atol=1e-2, rtol=1e-2), "mismatch vs bf16 reference (2-step split)"

    print("KERNEL_OK")
</pallas_src>

<mosaic_0001>
module attributes {stable_mosaic.version = 11 : i64} {
  func.func @_mlp_kernel(%arg0: i32, %arg1: memref<8x20xf32, #tpu.memory_space<vmem>>, %arg2: memref<20x1024xbf16, #tpu.memory_space<vmem>>, %arg3: memref<1024x512xbf16, #tpu.memory_space<vmem>>, %arg4: memref<512x256xbf16, #tpu.memory_space<vmem>>, %arg5: memref<256x128xbf16, #tpu.memory_space<vmem>>, %arg6: memref<128x128xbf16, #tpu.memory_space<vmem>>, %arg7: memref<128x128xbf16, #tpu.memory_space<vmem>>, %arg8: memref<128x128xbf16, #tpu.memory_space<vmem>>, %arg9: memref<128x128xbf16, #tpu.memory_space<vmem>>, %arg10: memref<1x2432xf32, #tpu.memory_space<vmem>>, %arg11: memref<8x128xf32, #tpu.memory_space<vmem>>) attributes {dimension_semantics = [#tpu.dimension_semantics<parallel>], iteration_bounds = array<i64: 1>, scalar_prefetch = 0 : i64, scratch_operands = 0 : i64, tpu.core_type = #tpu.core_type<tc>, window_params = [{transform_indices = @transform_0, window_bounds = array<i64: 8, 20>}, {pipeline_mode = #tpu.pipeline_mode<synchronous>, transform_indices = @transform_1, window_bounds = array<i64: 20, 1024>}, {pipeline_mode = #tpu.pipeline_mode<synchronous>, transform_indices = @transform_2, window_bounds = array<i64: 1024, 512>}, {pipeline_mode = #tpu.pipeline_mode<synchronous>, transform_indices = @transform_3, window_bounds = array<i64: 512, 256>}, {pipeline_mode = #tpu.pipeline_mode<synchronous>, transform_indices = @transform_4, window_bounds = array<i64: 256, 128>}, {pipeline_mode = #tpu.pipeline_mode<synchronous>, transform_indices = @transform_5, window_bounds = array<i64: 128, 128>}, {pipeline_mode = #tpu.pipeline_mode<synchronous>, transform_indices = @transform_6, window_bounds = array<i64: 128, 128>}, {pipeline_mode = #tpu.pipeline_mode<synchronous>, transform_indices = @transform_7, window_bounds = array<i64: 128, 128>}, {pipeline_mode = #tpu.pipeline_mode<synchronous>, transform_indices = @transform_8, window_bounds = array<i64: 128, 128>}, {pipeline_mode = #tpu.pipeline_mode<synchronous>, transform_indices = @transform_9, window_bounds = array<i64: 1, 2432>}, {transform_indices = @transform_10, window_bounds = array<i64: 8, 128>}]} {
    %c0 = arith.constant 0 : index
    %c0_0 = arith.constant 0 : index
    %0 = vector.load %arg1[%c0, %c0_0] : memref<8x20xf32, #tpu.memory_space<vmem>>, vector<8x20xf32>
    %c0_1 = arith.constant 0 : index
    %c0_2 = arith.constant 0 : index
    %1 = vector.load %arg2[%c0_1, %c0_2] : memref<20x1024xbf16, #tpu.memory_space<vmem>>, vector<20x1024xbf16>
    %c0_3 = arith.constant 0 : index
    %c0_4 = arith.constant 0 : index
    %2 = vector.load %arg10[%c0_3, %c0_4] : memref<1x2432xf32, #tpu.memory_space<vmem>>, vector<1x1024xf32>
    %3 = arith.truncf %0 : vector<8x20xf32> to vector<8x20xbf16>
    %cst = arith.constant dense<0.000000e+00> : vector<8x1024xf32>
    %4 = tpu.matmul %3, %1, %cst {dimension_numbers = #tpu.dot_dimension_numbers<[1], [0], [0], [1], [0, 0, 1, 1], [], []>} : vector<8x20xbf16>, vector<20x1024xbf16>, vector<8x1024xf32> -> vector<8x1024xf32>
    %5 = vector.broadcast %2 : vector<1x1024xf32> to vector<8x1024xf32>
    %6 = arith.addf %4, %5 : vector<8x1024xf32>
    %cst_5 = arith.constant 0.000000e+00 : f32
    %7 = vector.broadcast %cst_5 : f32 to vector<8x1024xf32>
    %8 = arith.maximumf %6, %7 : vector<8x1024xf32>
    %c0_6 = arith.constant 0 : index
    %c0_7 = arith.constant 0 : index
    %9 = vector.load %arg3[%c0_6, %c0_7] : memref<1024x512xbf16, #tpu.memory_space<vmem>>, vector<1024x512xbf16>
    %c0_8 = arith.constant 0 : index
    %c1024 = arith.constant 1024 : index
    %10 = vector.load %arg10[%c0_8, %c1024] : memref<1x2432xf32, #tpu.memory_space<vmem>>, vector<1x512xf32>
    %11 = arith.truncf %8 : vector<8x1024xf32> to vector<8x1024xbf16>
    %cst_9 = arith.constant dense<0.000000e+00> : vector<8x512xf32>
    %12 = tpu.matmul %11, %9, %cst_9 {dimension_numbers = #tpu.dot_dimension_numbers<[1], [0], [0], [1], [0, 0, 1, 1], [], []>} : vector<8x1024xbf16>, vector<1024x512xbf16>, vector<8x512xf32> -> vector<8x512xf32>
    %13 = vector.broadcast %10 : vector<1x512xf32> to vector<8x512xf32>
    %14 = arith.addf %12, %13 : vector<8x512xf32>
    %cst_10 = arith.constant 0.000000e+00 : f32
    %15 = vector.broadcast %cst_10 : f32 to vector<8x512xf32>
    %16 = arith.maximumf %14, %15 : vector<8x512xf32>
    %c0_11 = arith.constant 0 : index
    %c0_12 = arith.constant 0 : index
    %17 = vector.load %arg4[%c0_11, %c0_12] : memref<512x256xbf16, #tpu.memory_space<vmem>>, vector<512x256xbf16>
    %c0_13 = arith.constant 0 : index
    %c1536 = arith.constant 1536 : index
    %18 = vector.load %arg10[%c0_13, %c1536] : memref<1x2432xf32, #tpu.memory_space<vmem>>, vector<1x256xf32>
    %19 = arith.truncf %16 : vector<8x512xf32> to vector<8x512xbf16>
    %cst_14 = arith.constant dense<0.000000e+00> : vector<8x256xf32>
    %20 = tpu.matmul %19, %17, %cst_14 {dimension_numbers = #tpu.dot_dimension_numbers<[1], [0], [0], [1], [0, 0, 1, 1], [], []>} : vector<8x512xbf16>, vector<512x256xbf16>, vector<8x256xf32> -> vector<8x256xf32>
    %21 = vector.broadcast %18 : vector<1x256xf32> to vector<8x256xf32>
    %22 = arith.addf %20, %21 : vector<8x256xf32>
    %cst_15 = arith.constant 0.000000e+00 : f32
    %23 = vector.broadcast %cst_15 : f32 to vector<8x256xf32>
    %24 = arith.maximumf %22, %23 : vector<8x256xf32>
    %c0_16 = arith.constant 0 : index
    %c0_17 = arith.constant 0 : index
    %25 = vector.load %arg5[%c0_16, %c0_17] : memref<256x128xbf16, #tpu.memory_space<vmem>>, vector<256x128xbf16>
    %c0_18 = arith.constant 0 : index
    %c1792 = arith.constant 1792 : index
    %26 = vector.load %arg10[%c0_18, %c1792] : memref<1x2432xf32, #tpu.memory_space<vmem>>, vector<1x128xf32>
    %27 = arith.truncf %24 : vector<8x256xf32> to vector<8x256xbf16>
    %cst_19 = arith.constant dense<0.000000e+00> : vector<8x128xf32>
    %28 = tpu.matmul %27, %25, %cst_19 {dimension_numbers = #tpu.dot_dimension_numbers<[1], [0], [0], [1], [0, 0, 1, 1], [], []>} : vector<8x256xbf16>, vector<256x128xbf16>, vector<8x128xf32> -> vector<8x128xf32>
    %29 = vector.broadcast %26 : vector<1x128xf32> to vector<8x128xf32>
    %30 = arith.addf %28, %29 : vector<8x128xf32>
    %cst_20 = arith.constant 0.000000e+00 : f32
    %31 = vector.broadcast %cst_20 : f32 to vector<8x128xf32>
    %32 = arith.maximumf %30, %31 : vector<8x128xf32>
    %c0_21 = arith.constant 0 : index
    %c0_22 = arith.constant 0 : index
    %33 = vector.load %arg6[%c0_21, %c0_22] : memref<128x128xbf16, #tpu.memory_space<vmem>>, vector<128x128xbf16>
    %c0_23 = arith.constant 0 : index
    %c1920 = arith.constant 1920 : index
    %34 = vector.load %arg10[%c0_23, %c1920] : memref<1x2432xf32, #tpu.memory_space<vmem>>, vector<1x128xf32>
    %35 = arith.truncf %32 : vector<8x128xf32> to vector<8x128xbf16>
    %cst_24 = arith.constant dense<0.000000e+00> : vector<8x128xf32>
    %36 = tpu.matmul %35, %33, %cst_24 {dimension_numbers = #tpu.dot_dimension_numbers<[1], [0], [0], [1], [0, 0, 1, 1], [], []>} : vector<8x128xbf16>, vector<128x128xbf16>, vector<8x128xf32> -> vector<8x128xf32>
    %37 = vector.broadcast %34 : vector<1x128xf32> to vector<8x128xf32>
    %38 = arith.addf %36, %37 : vector<8x128xf32>
    %cst_25 = arith.constant 0.000000e+00 : f32
    %39 = vector.broadcast %cst_25 : f32 to vector<8x128xf32>
    %40 = arith.maximumf %38, %39 : vector<8x128xf32>
    %c0_26 = arith.constant 0 : index
    %c0_27 = arith.constant 0 : index
    %41 = vector.load %arg7[%c0_26, %c0_27] : memref<128x128xbf16, #tpu.memory_space<vmem>>, vector<128x128xbf16>
    %c0_28 = arith.constant 0 : index
    %c2048 = arith.constant 2048 : index
    %42 = vector.load %arg10[%c0_28, %c2048] : memref<1x2432xf32, #tpu.memory_space<vmem>>, vector<1x128xf32>
    %43 = arith.truncf %40 : vector<8x128xf32> to vector<8x128xbf16>
    %cst_29 = arith.constant dense<0.000000e+00> : vector<8x128xf32>
    %44 = tpu.matmul %43, %41, %cst_29 {dimension_numbers = #tpu.dot_dimension_numbers<[1], [0], [0], [1], [0, 0, 1, 1], [], []>} : vector<8x128xbf16>, vector<128x128xbf16>, vector<8x128xf32> -> vector<8x128xf32>
    %45 = vector.broadcast %42 : vector<1x128xf32> to vector<8x128xf32>
    %46 = arith.addf %44, %45 : vector<8x128xf32>
    %cst_30 = arith.constant 0.000000e+00 : f32
    %47 = vector.broadcast %cst_30 : f32 to vector<8x128xf32>
    %48 = arith.maximumf %46, %47 : vector<8x128xf32>
    %c0_31 = arith.constant 0 : index
    %c0_32 = arith.constant 0 : index
    %49 = vector.load %arg8[%c0_31, %c0_32] : memref<128x128xbf16, #tpu.memory_space<vmem>>, vector<128x128xbf16>
    %c0_33 = arith.constant 0 : index
    %c2176 = arith.constant 2176 : index
    %50 = vector.load %arg10[%c0_33, %c2176] : memref<1x2432xf32, #tpu.memory_space<vmem>>, vector<1x128xf32>
    %51 = arith.truncf %48 : vector<8x128xf32> to vector<8x128xbf16>
    %cst_34 = arith.constant dense<0.000000e+00> : vector<8x128xf32>
    %52 = tpu.matmul %51, %49, %cst_34 {dimension_numbers = #tpu.dot_dimension_numbers<[1], [0], [0], [1], [0, 0, 1, 1], [], []>} : vector<8x128xbf16>, vector<128x128xbf16>, vector<8x128xf32> -> vector<8x128xf32>
    %53 = vector.broadcast %50 : vector<1x128xf32> to vector<8x128xf32>
    %54 = arith.addf %52, %53 : vector<8x128xf32>
    %cst_35 = arith.constant 0.000000e+00 : f32
    %55 = vector.broadcast %cst_35 : f32 to vector<8x128xf32>
    %56 = arith.maximumf %54, %55 : vector<8x128xf32>
    %c0_36 = arith.constant 0 : index
    %c0_37 = arith.constant 0 : index
    %57 = vector.load %arg9[%c0_36, %c0_37] : memref<128x128xbf16, #tpu.memory_space<vmem>>, vector<128x128xbf16>
    %c0_38 = arith.constant 0 : index
    %c2304 = arith.constant 2304 : index
    %58 = vector.load %arg10[%c0_38, %c2304] : memref<1x2432xf32, #tpu.memory_space<vmem>>, vector<1x128xf32>
    %59 = arith.truncf %56 : vector<8x128xf32> to vector<8x128xbf16>
    %cst_39 = arith.constant dense<0.000000e+00> : vector<8x128xf32>
    %60 = tpu.matmul %59, %57, %cst_39 {dimension_numbers = #tpu.dot_dimension_numbers<[1], [0], [0], [1], [0, 0, 1, 1], [], []>} : vector<8x128xbf16>, vector<128x128xbf16>, vector<8x128xf32> -> vector<8x128xf32>
    %61 = vector.broadcast %58 : vector<1x128xf32> to vector<8x128xf32>
    %62 = arith.addf %60, %61 : vector<8x128xf32>
    %c0_40 = arith.constant 0 : index
    %c0_41 = arith.constant 0 : index
    %63 = vector.load %arg11[%c0_40, %c0_41] : memref<8x128xf32, #tpu.memory_space<vmem>>, vector<8x128xf32>
    tpu.vector_store %arg11[%c0_40, %c0_41], %62 {strides = array<i32>} : memref<8x128xf32, #tpu.memory_space<vmem>>, vector<8x128xf32>,
    return
  }
  func.func @transform_0(%arg0: i32) -> (i32, i32) {
    %c0_i32 = arith.constant 0 : i32
    %c0_i32_0 = arith.constant 0 : i32
    return %arg0, %c0_i32 : i32, i32
  }
  func.func @transform_1(%arg0: i32) -> (i32, i32) {
    %c0_i32 = arith.constant 0 : i32
    %c0_i32_0 = arith.constant 0 : i32
    %c0_i32_1 = arith.constant 0 : i32
    return %c0_i32, %c0_i32_0 : i32, i32
  }
  func.func @transform_2(%arg0: i32) -> (i32, i32) {
    %c0_i32 = arith.constant 0 : i32
    %c0_i32_0 = arith.constant 0 : i32
    %c0_i32_1 = arith.constant 0 : i32
    return %c0_i32, %c0_i32_0 : i32, i32
  }
  func.func @transform_3(%arg0: i32) -> (i32, i32) {
    %c0_i32 = arith.constant 0 : i32
    %c0_i32_0 = arith.constant 0 : i32
    %c0_i32_1 = arith.constant 0 : i32
    return %c0_i32, %c0_i32_0 : i32, i32
  }
  func.func @transform_4(%arg0: i32) -> (i32, i32) {
    %c0_i32 = arith.constant 0 : i32
    %c0_i32_0 = arith.constant 0 : i32
    %c0_i32_1 = arith.constant 0 : i32
    return %c0_i32, %c0_i32_0 : i32, i32
  }
  func.func @transform_5(%arg0: i32) -> (i32, i32) {
    %c0_i32 = arith.constant 0 : i32
    %c0_i32_0 = arith.constant 0 : i32
    %c0_i32_1 = arith.constant 0 : i32
    return %c0_i32, %c0_i32_0 : i32, i32
  }
  func.func @transform_6(%arg0: i32) -> (i32, i32) {
    %c0_i32 = arith.constant 0 : i32
    %c0_i32_0 = arith.constant 0 : i32
    %c0_i32_1 = arith.constant 0 : i32
    return %c0_i32, %c0_i32_0 : i32, i32
  }
  func.func @transform_7(%arg0: i32) -> (i32, i32) {
    %c0_i32 = arith.constant 0 : i32
    %c0_i32_0 = arith.constant 0 : i32
    %c0_i32_1 = arith.constant 0 : i32
    return %c0_i32, %c0_i32_0 : i32, i32
  }
  func.func @transform_8(%arg0: i32) -> (i32, i32) {
    %c0_i32 = arith.constant 0 : i32
    %c0_i32_0 = arith.constant 0 : i32
    %c0_i32_1 = arith.constant 0 : i32
    return %c0_i32, %c0_i32_0 : i32, i32
  }
  func.func @transform_9(%arg0: i32) -> (i32, i32) {
    %c0_i32 = arith.constant 0 : i32
    %c0_i32_0 = arith.constant 0 : i32
    %c0_i32_1 = arith.constant 0 : i32
    return %c0_i32, %c0_i32_0 : i32, i32
  }
  func.func @transform_10(%arg0: i32) -> (i32, i32) {
    %c0_i32 = arith.constant 0 : i32
    %c0_i32_0 = arith.constant 0 : i32
    return %arg0, %c0_i32 : i32, i32
  }
}

</mosaic_0001>

<bundles_post_ra>
// kernel: neural_network_forward.1
= control target key start
LH: loop header
LB: loop body
LE: loop exit
PB: predicated region body
PF: predicated region fallthrough
CT: control target
= control target key end

     0   :  { %vm133_vm0 = vcmask 1041408   ;;  %vm129_vm1 = vcmask 162816   ;;  %s7532_s0 = inlined_call_operand.vmem [shape: f32[8,20], index: 0, kind: input, shape index: {}]   ;;  %s7533_s1 = inlined_call_operand.vmem [shape: bf16[20,1024], index: 1, kind: input, shape index: {}]   ;;  %s7534_s2 = inlined_call_operand.vmem [shape: bf16[1024,512], index: 2, kind: input, shape index: {}]   ;;  %s7535_s3 = inlined_call_operand.vmem [shape: bf16[512,256], index: 3, kind: input, shape index: {}]   ;;  %s7536_s4 = inlined_call_operand.vmem [shape: bf16[256,128], index: 4, kind: input, shape index: {}]   ;;  %s7537_s5 = inlined_call_operand.vmem [shape: bf16[128,128], index: 5, kind: input, shape index: {}]   ;;  %s7538_s6 = inlined_call_operand.vmem [shape: bf16[128,128], index: 6, kind: input, shape index: {}]   ;;  %s7539_s7 = inlined_call_operand.vmem [shape: bf16[128,128], index: 7, kind: input, shape index: {}]   ;;  %s7540_s8 = inlined_call_operand.vmem [shape: bf16[128,128], index: 8, kind: input, shape index: {}]   ;;  %s7541_s9 = inlined_call_operand.vmem [shape: f32[1,2432], index: 9, kind: input, shape index: {}]   ;;  %s7542_s10 = inlined_call_operand.hbm [shape: f32[8,128], index: 10, kind: output, shape index: {}]  }
   0x1   :  { %v46_v0 = vld [vmem:[%s7533_s1 + $0x40] sm:$0x33]  ;;  %v47_v4 = vld [vmem:[%s7533_s1 + $0x48] sm:$0x33]  ;;  %v48_v12 = vld [vmem:[%s7533_s1 + $0x50] sm:$0x33] }
   0x2   :  { %v97_v1 = vunpack.c.l.b16 %v46_v0  ;;  %v98_v2 = vunpack.c.h.b16 %v46_v0  ;;  %v3255_v3 = vld [vmem:[%s7533_s1] sm:$0xf]  ;;  %v4765_v8 = vld [vmem:[%s7533_s1 + $0x4] sm:$0xf]  ;;  %v99_v10 = vunpack.c.l.b16 %v47_v4  ;;  %v100_v11 = vunpack.c.h.b16 %v47_v4  ;;  %v3263_v20 = vld [vmem:[%s7533_s1 + $0x8] sm:$0xf] }
   0x3   :  { %v4769_v7 = vld [vmem:[%s7533_s1 + $0x1c] sm:$0xf0]  ;;  %v3257_v9 = vld [vmem:[%s7533_s1 + $0x20] sm:$0xf0]  ;;  %v4770_v21 = vld [vmem:[%s7533_s1 + $0x24] sm:$0xf0]  ;;  %v101_v24 = vunpack.c.l.b16 %v48_v12  ;;  %v102_v25 = vunpack.c.h.b16 %v48_v12 }
   0x4   :  { %v113_v5 = vpack.c.b16 %v97_v1, %v97_v1  ;;  %v114_v6 = vpack.c.b16 %v98_v2, %v98_v2  ;;  %v37_v15 = vld [vmem:[%s7532_s0] sm:$0xff]  ;;  %v115_v16 = vpack.c.b16 %v99_v10, %v99_v10  ;;  %v116_v17 = vpack.c.b16 %v100_v11, %v100_v11  ;;  %v4766_v22 = vld [vmem:[%s7533_s1 + $0xc] sm:$0xf]  ;;  %v49_v26 = vld [vmem:[%s7533_s1 + $0x58] sm:$0x33] }
   0x5   :  { %v3256_v18 = vor.u32 %v4769_v7, %v3255_v3  ;;  %v3260_v19 = vor.u32 %v4765_v8, %v3257_v9  ;;  %v3265_v23 = vld [vmem:[%s7533_s1 + $0x28] sm:$0xf0]  ;;  %v3271_v29 = vld [vmem:[%s7533_s1 + $0x10] sm:$0xf]  ;;  %v4767_v31 = vld [vmem:[%s7533_s1 + $0x14] sm:$0xf]  ;;  %v103_v33 = vunpack.c.l.b16 %v49_v26  ;;  %v104_v34 = vunpack.c.h.b16 %v49_v26 }
   0x6   :  { %v135_v13 = vsel %vm133_vm0, %v113_v5, 0  ;;  %v138_v14 = vsel %vm133_vm0, %v114_v6, 0  ;;  %v141_v27 = vsel %vm133_vm0, %v115_v16, 0  ;;  %v144_v28 = vsel %vm133_vm0, %v116_v17, 0  ;;  %v4771_v30 = vld [vmem:[%s7533_s1 + $0x2c] sm:$0xf0] }
   0x7   :  { %164 = vmatpush.bf16.msra.mxu2 %v135_v13  ;;  %177 = vmatpush.bf16.msra.mxu3 %v138_v14  ;;  %v3273_v32 = vld [vmem:[%s7533_s1 + $0x30] sm:$0xf0]  ;;  %v117_v35 = vpack.c.b16 %v101_v24, %v101_v24  ;;  %v118_v36 = vpack.c.b16 %v102_v25, %v102_v25  ;;  %v5285_v37 = vpack.c.bf16 %v37_v15, %v37_v15 }
   0x8   :  { %15 = vsyncpa [#allocation3], 0  ;;  %v119_v40 = vpack.c.b16 %v103_v33, %v103_v33  ;;  %v120_v41 = vpack.c.b16 %v104_v34, %v104_v34  ;;  %v3264_v42 = vor.u32 %v4770_v21, %v3263_v20  ;;  %v3268_v43 = vor.u32 %v4766_v22, %v3265_v23  ;;  %v3279_v46 = vld [vmem:[%s7533_s1 + $0x18] sm:$0xf]  ;;  %v4768_v48 = vld [vmem:[%s7533_s1 + $0x1c] sm:$0xf] }
   0x9   :  { %v147_v38 = vsel %vm133_vm0, %v117_v35, 0  ;;  %v150_v39 = vsel %vm133_vm0, %v118_v36, 0  ;;  %v3272_v44 = vor.u32 %v4771_v30, %v3271_v29  ;;  %v3276_v45 = vor.u32 %v4767_v31, %v3273_v32  ;;  %v4772_v47 = vld [vmem:[%s7533_s1 + $0x34] sm:$0xf0]  ;;  %v3281_v49 = vld [vmem:[%s7533_s1 + $0x38] sm:$0xf0] }
   0xa   :  { %216 = vmatpush.bf16.msra.mxu0 %v147_v38  ;;  %229 = vmatpush.bf16.msra.mxu1 %v150_v39  ;;  %v3407_v50 = vld [vmem:[%s7534_s2 + $0xe0] sm:$0xf]  ;;  %v4803_v51 = vld [vmem:[%s7534_s2 + $0xec] sm:$0xf0]  ;;  %v153_v53 = vsel %vm133_vm0, %v119_v40, 0  ;;  %v156_v54 = vsel %vm133_vm0, %v120_v41, 0  ;;  %v3280_v62 = vor.u32 %v4772_v47, %v3279_v46  ;;  %v3284_v63 = vor.u32 %v4768_v48, %v3281_v49 }
   0xb   :  { %165 = vmatpush.bf16.msra.mxu2 %v3256_v18  ;;  %178 = vmatpush.bf16.msra.mxu3 %v3260_v19  ;;  %v3535_v52 = vld [vmem:[%s7534_s2 + $0x1e0] sm:$0xf]  ;;  %v3408_v55 = vor.u32 %v4803_v51, %v3407_v50  ;;  %v4835_v56 = vld [vmem:[%s7534_s2 + $0x1ec] sm:$0xf0]  ;;  %s5174_s16 = smov [#allocation2]  }
   0xc   :  { %v3391_v57 = vld [vmem:[%s7534_s2 + $0xc0] sm:$0xf]  ;;  %v3536_v58 = vor.u32 %v4835_v56, %v3535_v52  ;;  %v4799_v59 = vld [vmem:[%s7534_s2 + $0xcc] sm:$0xf0]  ;;  %s3242_s17 = sshll.u32 %s5174_s16, 4  ;;  %s3243_s17 = int_to_ptr.vmem [resolvable:$true] %s3242_s17 }
   0xd   :  { %v3519_v60 = vld [vmem:[%s7534_s2 + $0x1c0] sm:$0xf]  ;;  %v4831_v61 = vld [vmem:[%s7534_s2 + $0x1cc] sm:$0xf0]  ;;  %v3392_v0 = vor.u32 %v4799_v59, %v3391_v57 }
   0xe   :  { %3285 = vmatmul.msk.bf16.vlgmr.msra.gmra.mxu2 %vm129_vm1, %v5285_v37  ;;  %3286 = vmatmul.msk.bf16.vlgmr.msra.gmra.mxu3 %vm129_vm1, %v5285_v37  ;;  %v3520_v1 = vor.u32 %v4831_v61, %v3519_v60  ;;  %v3375_v2 = vld [vmem:[%s7534_s2 + $0xa0] sm:$0xf]  ;;  %v4795_v3 = vld [vmem:[%s7534_s2 + $0xac] sm:$0xf0] }
   0xf   :  { %190 = vmatpush.bf16.msrb.mxu2 %v141_v27  ;;  %203 = vmatpush.bf16.msrb.mxu3 %v144_v28  ;;  %v3503_v4 = vld [vmem:[%s7534_s2 + $0x1a0] sm:$0xf]  ;;  %v4827_v5 = vld [vmem:[%s7534_s2 + $0x1ac] sm:$0xf0]  ;;  %v3376_v6 = vor.u32 %v4795_v3, %v3375_v2 }
  0x10   :  { %217 = vmatpush.bf16.msra.mxu0 %v3272_v44  ;;  %230 = vmatpush.bf16.msra.mxu1 %v3276_v45  ;;  %v3504_v7 = vor.u32 %v4827_v5, %v3503_v4  ;;  %v3359_v8 = vld [vmem:[%s7534_s2 + $0x80] sm:$0xf]  ;;  %v4791_v9 = vld [vmem:[%s7534_s2 + $0x8c] sm:$0xf0] }
  0x11   :  { %v3487_v10 = vld [vmem:[%s7534_s2 + $0x180] sm:$0xf]  ;;  %v4823_v11 = vld [vmem:[%s7534_s2 + $0x18c] sm:$0xf0]  ;;  %v3360_v16 = vor.u32 %v4791_v9, %v3359_v8 }
  0x12   :  { %v3663_v12 = vld [vmem:[%s7534_s2 + $0x2e0] sm:$0xf]  ;;  %v4867_v13 = vld [vmem:[%s7534_s2 + $0x2ec] sm:$0xf0]  ;;  %v3488_v17 = vor.u32 %v4823_v11, %v3487_v10 }
  0x13   :  { %191 = vmatpush.bf16.msrb.mxu2 %v3264_v42  ;;  %204 = vmatpush.bf16.msrb.mxu3 %v3268_v43  ;;  %v3791_v14 = vld [vmem:[%s7534_s2 + $0x3e0] sm:$0xf]  ;;  %v4899_v15 = vld [vmem:[%s7534_s2 + $0x3ec] sm:$0xf0]  ;;  %v3664_v22 = vor.u32 %v4867_v13, %v3663_v12 }
  0x14   :  { %1824 = vmatpush.bf16.msrb.mxu0 %v3408_v55  ;;  %1837 = vmatpush.bf16.msrb.mxu1 %v3536_v58  ;;  %v3343_v18 = vld [vmem:[%s7534_s2 + $0x60] sm:$0xf]  ;;  %v4787_v19 = vld [vmem:[%s7534_s2 + $0x6c] sm:$0xf0]  ;;  %v3792_v23 = vor.u32 %v4899_v15, %v3791_v14 }
  0x15   :  { %3289 = vmatmul.msk.bf16.vlgmr.msra.gmra.mxu0 %vm129_vm1, %v5285_v37  ;;  %3290 = vmatmul.msk.bf16.vlgmr.msra.gmra.mxu1 %vm129_vm1, %v5285_v37  ;;  %v3471_v20 = vld [vmem:[%s7534_s2 + $0x160] sm:$0xf]  ;;  %v4819_v21 = vld [vmem:[%s7534_s2 + $0x16c] sm:$0xf0]  ;;  %v3344_v28 = vor.u32 %v4787_v19, %v3343_v18 }
  0x16   :  { %v3647_v24 = vld [vmem:[%s7534_s2 + $0x2c0] sm:$0xf]  ;;  %v4863_v25 = vld [vmem:[%s7534_s2 + $0x2cc] sm:$0xf0]  ;;  %v3472_v29 = vor.u32 %v4819_v21, %v3471_v20 }
  0x17   :  { %242 = vmatpush.bf16.msra.mxu2 %v153_v53  ;;  %255 = vmatpush.bf16.msra.mxu3 %v156_v54  ;;  %v3775_v26 = vld [vmem:[%s7534_s2 + $0x3c0] sm:$0xf]  ;;  %v4895_v27 = vld [vmem:[%s7534_s2 + $0x3cc] sm:$0xf0]  ;;  %v3648_v34 = vor.u32 %v4863_v25, %v3647_v24 }
  0x18   :  { %1825 = vmatpush.bf16.msrb.mxu0 %v3392_v0  ;;  %1838 = vmatpush.bf16.msrb.mxu1 %v3520_v1  ;;  %v3327_v30 = vld [vmem:[%s7534_s2 + $0x40] sm:$0xf]  ;;  %v4783_v31 = vld [vmem:[%s7534_s2 + $0x4c] sm:$0xf0]  ;;  %v3776_v35 = vor.u32 %v4895_v27, %v3775_v26 }
  0x19   :  { %v3455_v32 = vld [vmem:[%s7534_s2 + $0x140] sm:$0xf]  ;;  %v4815_v33 = vld [vmem:[%s7534_s2 + $0x14c] sm:$0xf0]  ;;  %v3328_v41 = vor.u32 %v4783_v31, %v3327_v30 }
  0x1a   :  { %v3631_v36 = vld [vmem:[%s7534_s2 + $0x2a0] sm:$0xf]  ;;  %v4859_v38 = vld [vmem:[%s7534_s2 + $0x2ac] sm:$0xf0]  ;;  %v3456_v42 = vor.u32 %v4815_v33, %v3455_v32 }
  0x1b   :  { %243 = vmatpush.bf16.msra.mxu2 %v3280_v62  ;;  %256 = vmatpush.bf16.msra.mxu3 %v3284_v63  ;;  %v3759_v39 = vld [vmem:[%s7534_s2 + $0x3a0] sm:$0xf]  ;;  %v4891_v40 = vld [vmem:[%s7534_s2 + $0x3ac] sm:$0xf0]  ;;  %v3632_v47 = vor.u32 %v4859_v38, %v3631_v36 }
  0x1c   :  { %1826 = vmatpush.bf16.msrb.mxu0 %v3376_v6  ;;  %1839 = vmatpush.bf16.msrb.mxu1 %v3504_v7  ;;  %v3311_v43 = vld [vmem:[%s7534_s2 + $0x20] sm:$0xf]  ;;  %v4779_v44 = vld [vmem:[%s7534_s2 + $0x2c] sm:$0xf0]  ;;  %v3760_v48 = vor.u32 %v4891_v40, %v3759_v39 }
  0x1d   :  { %v3439_v45 = vld [vmem:[%s7534_s2 + $0x120] sm:$0xf]  ;;  %v4811_v46 = vld [vmem:[%s7534_s2 + $0x12c] sm:$0xf0]  ;;  %v3312_v53 = vor.u32 %v4779_v44, %v3311_v43 }
  0x1e   :  { %3287 = vmatmul.msk.bf16.vlgmr.msrb.gmra.mxu2 %vm129_vm1, %v5285_v37  ;;  %3288 = vmatmul.msk.bf16.vlgmr.msrb.gmra.mxu3 %vm129_vm1, %v5285_v37  ;;  %v3615_v49 = vld [vmem:[%s7534_s2 + $0x280] sm:$0xf]  ;;  %v4855_v50 = vld [vmem:[%s7534_s2 + $0x28c] sm:$0xf0]  ;;  %v3440_v54 = vor.u32 %v4811_v46, %v3439_v45 }
  0x1f   :  { %1850 = vmatpush.bf16.msrb.mxu2 %v3664_v22  ;;  %1863 = vmatpush.bf16.msrb.mxu3 %v3792_v23  ;;  %v3743_v51 = vld [vmem:[%s7534_s2 + $0x380] sm:$0xf]  ;;  %v4887_v52 = vld [vmem:[%s7534_s2 + $0x38c] sm:$0xf0]  ;;  %v3616_v59 = vor.u32 %v4855_v50, %v3615_v49 }
  0x20   :  { %1827 = vmatpush.bf16.msrb.mxu0 %v3360_v16  ;;  %1840 = vmatpush.bf16.msrb.mxu1 %v3488_v17  ;;  %v3295_v55 = vld [vmem:[%s7534_s2] sm:$0xf]  ;;  %v4775_v56 = vld [vmem:[%s7534_s2 + $0xc] sm:$0xf0]  ;;  %v3744_v60 = vor.u32 %v4887_v52, %v3743_v51 }
  0x21   :  { %v3423_v57 = vld [vmem:[%s7534_s2 + $0x100] sm:$0xf]  ;;  %v4807_v58 = vld [vmem:[%s7534_s2 + $0x10c] sm:$0xf0]  ;;  %v3296_v5 = vor.u32 %v4775_v56, %v3295_v55 }
  0x22   :  { %v3919_v61 = vld [vmem:[%s7534_s2 + $0x4e0] sm:$0xf]  ;;  %v4931_v62 = vld [vmem:[%s7534_s2 + $0x4ec] sm:$0xf0]  ;;  %v3424_v6 = vor.u32 %v4807_v58, %v3423_v57 }
  0x23   :  { %1851 = vmatpush.bf16.msrb.mxu2 %v3648_v34  ;;  %1864 = vmatpush.bf16.msrb.mxu3 %v3776_v35  ;;  %v4047_v63 = vld [vmem:[%s7534_s2 + $0x5e0] sm:$0xf]  ;;  %v4963_v0 = vld [vmem:[%s7534_s2 + $0x5ec] sm:$0xf0]  ;;  %v3920_v7 = vor.u32 %v4931_v62, %v3919_v61 }
  0x24   :  { %1828 = vmatpush.bf16.msrb.mxu0 %v3344_v28  ;;  %1841 = vmatpush.bf16.msrb.mxu1 %v3472_v29  ;;  %v3599_v1 = vld [vmem:[%s7534_s2 + $0x260] sm:$0xf]  ;;  %v4851_v2 = vld [vmem:[%s7534_s2 + $0x26c] sm:$0xf0]  ;;  %v4048_v8 = vor.u32 %v4963_v0, %v4047_v63 }
  0x25   :  { %v3727_v3 = vld [vmem:[%s7534_s2 + $0x360] sm:$0xf]  ;;  %v4883_v4 = vld [vmem:[%s7534_s2 + $0x36c] sm:$0xf0]  ;;  %v3600_v11 = vor.u32 %v4851_v2, %v3599_v1 }
  0x26   :  { %v3903_v9 = vld [vmem:[%s7534_s2 + $0x4c0] sm:$0xf]  ;;  %v4927_v10 = vld [vmem:[%s7534_s2 + $0x4cc] sm:$0xf0]  ;;  %v3728_v12 = vor.u32 %v4883_v4, %v3727_v3 }
  0x27   :  { %1852 = vmatpush.bf16.msrb.mxu2 %v3632_v47  ;;  %1865 = vmatpush.bf16.msrb.mxu3 %v3760_v48  ;;  %v4031_v13 = vld [vmem:[%s7534_s2 + $0x5c0] sm:$0xf]  ;;  %v4959_v14 = vld [vmem:[%s7534_s2 + $0x5cc] sm:$0xf0]  ;;  %v3904_v19 = vor.u32 %v4927_v10, %v3903_v9 }
  0x28   :  { %1829 = vmatpush.bf16.msrb.mxu0 %v3328_v41  ;;  %1842 = vmatpush.bf16.msrb.mxu1 %v3456_v42  ;;  %v3583_v15 = vld [vmem:[%s7534_s2 + $0x240] sm:$0xf]  ;;  %v4847_v16 = vld [vmem:[%s7534_s2 + $0x24c] sm:$0xf0]  ;;  %v4032_v20 = vor.u32 %v4959_v14, %v4031_v13 }
  0x29   :  { %v3711_v17 = vld [vmem:[%s7534_s2 + $0x340] sm:$0xf]  ;;  %v4879_v18 = vld [vmem:[%s7534_s2 + $0x34c] sm:$0xf0]  ;;  %v3584_v22 = vor.u32 %v4847_v16, %v3583_v15 }
  0x2a   :  { %v4923_v21 = vld [vmem:[%s7534_s2 + $0x4ac] sm:$0xf0]  ;;  %v3712_v23 = vor.u32 %v4879_v18, %v3711_v17  ;;  %v4015_v24 = vld [vmem:[%s7534_s2 + $0x5a0] sm:$0xf] }
  0x2b   :  { %1853 = vmatpush.bf16.msrb.mxu2 %v3616_v59  ;;  %1866 = vmatpush.bf16.msrb.mxu3 %v3744_v60  ;;  %v4955_v25 = vld [vmem:[%s7534_s2 + $0x5ac] sm:$0xf0]  ;;  %v3567_v26 = vld [vmem:[%s7534_s2 + $0x220] sm:$0xf] }
  0x2c   :  { %1830 = vmatpush.bf16.msrb.mxu0 %v3312_v53  ;;  %1843 = vmatpush.bf16.msrb.mxu1 %v3440_v54  ;;  %v4843_v27 = vld [vmem:[%s7534_s2 + $0x22c] sm:$0xf0]  ;;  %v3695_v28 = vld [vmem:[%s7534_s2 + $0x320] sm:$0xf]  ;;  %v4016_v31 = vor.u32 %v4955_v25, %v4015_v24 }
  0x2d   :  { %v4875_v29 = vld [vmem:[%s7534_s2 + $0x32c] sm:$0xf0]  ;;  %v3871_v32 = vld [vmem:[%s7534_s2 + $0x480] sm:$0xf]  ;;  %v3568_v35 = vor.u32 %v4843_v27, %v3567_v26 }
  0x2e   :  { %3291 = vmatmul.msk.bf16.vlgmr.msra.gmra.mxu2 %vm129_vm1, %v5285_v37  ;;  %3292 = vmatmul.msk.bf16.vlgmr.msra.gmra.mxu3 %vm129_vm1, %v5285_v37  ;;  %v3887_v37 = vld [vmem:[%s7534_s2 + $0x4a0] sm:$0xf]  ;;  %v4919_v33 = vld [vmem:[%s7534_s2 + $0x48c] sm:$0xf0]  ;;  %v3696_v36 = vor.u32 %v4875_v29, %v3695_v28 }
  0x2f   :  { %1854 = vmatpush.bf16.msrb.mxu2 %v3600_v11  ;;  %1867 = vmatpush.bf16.msrb.mxu3 %v3728_v12  ;;  %v3888_v30 = vor.u32 %v4923_v21, %v3887_v37  ;;  %v3999_v34 = vld [vmem:[%s7534_s2 + $0x580] sm:$0xf]  ;;  %v4951_v38 = vld [vmem:[%s7534_s2 + $0x58c] sm:$0xf0]  ;;  %v3872_v47 = vor.u32 %v4919_v33, %v3871_v32 }
  0x30   :  { %1831 = vmatpush.bf16.msrb.mxu0 %v3296_v5  ;;  %1844 = vmatpush.bf16.msrb.mxu1 %v3424_v6  ;;  %v3551_v39 = vld [vmem:[%s7534_s2 + $0x200] sm:$0xf]  ;;  %v4839_v40 = vld [vmem:[%s7534_s2 + $0x20c] sm:$0xf0]  ;;  %v4000_v48 = vor.u32 %v4951_v38, %v3999_v34 }
  0x31   :  { %v3679_v41 = vld [vmem:[%s7534_s2 + $0x300] sm:$0xf]  ;;  %v4871_v42 = vld [vmem:[%s7534_s2 + $0x30c] sm:$0xf0]  ;;  %v3552_v50 = vor.u32 %v4839_v40, %v3551_v39 }
  0x32   :  { %v4175_v43 = vld [vmem:[%s7534_s2 + $0x6e0] sm:$0xf]  ;;  %v4995_v44 = vld [vmem:[%s7534_s2 + $0x6ec] sm:$0xf0]  ;;  %v3680_v51 = vor.u32 %v4871_v42, %v3679_v41 }
  0x33   :  { %1855 = vmatpush.bf16.msrb.mxu2 %v3584_v22  ;;  %1868 = vmatpush.bf16.msrb.mxu3 %v3712_v23  ;;  %v4303_v45 = vld [vmem:[%s7534_s2 + $0x7e0] sm:$0xf]  ;;  %v5027_v46 = vld [vmem:[%s7534_s2 + $0x7ec] sm:$0xf0]  ;;  %v4176_v55 = vor.u32 %v4995_v44, %v4175_v43 }
  0x34   :  { %1876 = vmatpush.bf16.msra.mxu0 %v3920_v7  ;;  %1889 = vmatpush.bf16.msra.mxu1 %v4048_v8  ;;  %v3855_v49 = vld [vmem:[%s7534_s2 + $0x460] sm:$0xf]  ;;  %v4915_v52 = vld [vmem:[%s7534_s2 + $0x46c] sm:$0xf0]  ;;  %v4304_v56 = vor.u32 %v5027_v46, %v4303_v45 }
  0x35   :  { %v3983_v53 = vld [vmem:[%s7534_s2 + $0x560] sm:$0xf]  ;;  %v4947_v54 = vld [vmem:[%s7534_s2 + $0x56c] sm:$0xf0]  ;;  %v3856_v61 = vor.u32 %v4915_v52, %v3855_v49 }
  0x36   :  { %v4159_v57 = vld [vmem:[%s7534_s2 + $0x6c0] sm:$0xf]  ;;  %v4991_v58 = vld [vmem:[%s7534_s2 + $0x6cc] sm:$0xf0]  ;;  %v3984_v62 = vor.u32 %v4947_v54, %v3983_v53 }
  0x37   :  { %1856 = vmatpush.bf16.msrb.mxu2 %v3568_v35  ;;  %1869 = vmatpush.bf16.msrb.mxu3 %v3696_v36  ;;  %v4287_v59 = vld [vmem:[%s7534_s2 + $0x7c0] sm:$0xf]  ;;  %v5023_v60 = vld [vmem:[%s7534_s2 + $0x7cc] sm:$0xf0]  ;;  %v4160_v3 = vor.u32 %v4991_v58, %v4159_v57 }
  0x38   :  { %1877 = vmatpush.bf16.msra.mxu0 %v3904_v19  ;;  %1890 = vmatpush.bf16.msra.mxu1 %v4032_v20  ;;  %v3839_v63 = vld [vmem:[%s7534_s2 + $0x440] sm:$0xf]  ;;  %v4911_v0 = vld [vmem:[%s7534_s2 + $0x44c] sm:$0xf0]  ;;  %v4288_v4 = vor.u32 %v5023_v60, %v4287_v59  ;;  %v4801_v60 = vld [vmem:[%s7534_s2 + $0xe4] sm:$0xf] }
  0x39   :  { %v3967_v1 = vld [vmem:[%s7534_s2 + $0x540] sm:$0xf]  ;;  %v4943_v2 = vld [vmem:[%s7534_s2 + $0x54c] sm:$0xf0]  ;;  %v3840_v5 = vor.u32 %v4911_v0, %v3839_v63  ;;  %v3409_v63 = vld [vmem:[%s7534_s2 + $0xf0] sm:$0xf0] }
  0x3a   :  { %v3968_v6 = vor.u32 %v4943_v2, %v3967_v1  ;;  %v3823_v7 = vld [vmem:[%s7534_s2 + $0x420] sm:$0xf]  ;;  %v4907_v8 = vld [vmem:[%s7534_s2 + $0x42c] sm:$0xf0]  ;;  %v4833_v0 = vld [vmem:[%s7534_s2 + $0x1e4] sm:$0xf] }
  0x3b   :  { %1857 = vmatpush.bf16.msrb.mxu2 %v3552_v50  ;;  %1870 = vmatpush.bf16.msrb.mxu3 %v3680_v51  ;;  %v3824_v9 = vor.u32 %v4907_v8, %v3823_v7  ;;  %v3951_v10 = vld [vmem:[%s7534_s2 + $0x520] sm:$0xf]  ;;  %v4939_v11 = vld [vmem:[%s7534_s2 + $0x52c] sm:$0xf0]  ;;  %v3537_v1 = vld [vmem:[%s7534_s2 + $0x1f0] sm:$0xf0] }
  0x3c   :  { %1878 = vmatpush.bf16.msra.mxu0 %v3888_v30  ;;  %1891 = vmatpush.bf16.msra.mxu1 %v4016_v31  ;;  %v4143_v12 = vld [vmem:[%s7534_s2 + $0x6a0] sm:$0xf]  ;;  %v3952_v13 = vor.u32 %v4939_v11, %v3951_v10  ;;  %v4987_v14 = vld [vmem:[%s7534_s2 + $0x6ac] sm:$0xf0]  ;;  %v3540_v7 = vor.u32 %v4833_v0, %v3537_v1  ;;  %v4797_v8 = vld [vmem:[%s7534_s2 + $0xc4] sm:$0xf] }
  0x3d   :  { %v4271_v15 = vld [vmem:[%s7534_s2 + $0x7a0] sm:$0xf]  ;;  %v5019_v16 = vld [vmem:[%s7534_s2 + $0x7ac] sm:$0xf0]  ;;  %v4144_v17 = vor.u32 %v4987_v14, %v4143_v12  ;;  %v3393_v11 = vld [vmem:[%s7534_s2 + $0xd0] sm:$0xf0] }
  0x3e   :  { %v4272_v18 = vor.u32 %v5019_v16, %v4271_v15  ;;  %v3807_v19 = vld [vmem:[%s7534_s2 + $0x400] sm:$0xf]  ;;  %v4903_v20 = vld [vmem:[%s7534_s2 + $0x40c] sm:$0xf0]  ;;  %v4829_v12 = vld [vmem:[%s7534_s2 + $0x1c4] sm:$0xf] }
  0x3f   :  { %1902 = vmatpush.bf16.msra.mxu2 %v4176_v55  ;;  %1915 = vmatpush.bf16.msra.mxu3 %v4304_v56  ;;  %v3935_v37 = vld [vmem:[%s7534_s2 + $0x500] sm:$0xf]  ;;  %v3808_v21 = vor.u32 %v4903_v20, %v3807_v19  ;;  %v4935_v22 = vld [vmem:[%s7534_s2 + $0x50c] sm:$0xf0]  ;;  %v4793_v14 = vld [vmem:[%s7534_s2 + $0xa4] sm:$0xf] }
  0x40   :  { %1879 = vmatpush.bf16.msra.mxu0 %v3872_v47  ;;  %1892 = vmatpush.bf16.msra.mxu1 %v4000_v48  ;;  %v4127_v23 = vld [vmem:[%s7534_s2 + $0x680] sm:$0xf]  ;;  %v4983_v24 = vld [vmem:[%s7534_s2 + $0x68c] sm:$0xf0]  ;;  %v3936_v25 = vor.u32 %v4935_v22, %v3935_v37  ;;  %v3377_v15 = vld [vmem:[%s7534_s2 + $0xb0] sm:$0xf0] }
  0x41   :  { %v4128_v26 = vor.u32 %v4983_v24, %v4127_v23  ;;  %v4255_v27 = vld [vmem:[%s7534_s2 + $0x780] sm:$0xf]  ;;  %v5015_v28 = vld [vmem:[%s7534_s2 + $0x78c] sm:$0xf0]  ;;  %v4825_v20 = vld [vmem:[%s7534_s2 + $0x1a4] sm:$0xf] }
  0x42   :  { %v4256_v29 = vor.u32 %v5015_v28, %v4255_v27  ;;  %v4111_v30 = vld [vmem:[%s7534_s2 + $0x660] sm:$0xf]  ;;  %v4979_v31 = vld [vmem:[%s7534_s2 + $0x66c] sm:$0xf0]  ;;  %v3505_v37 = vld [vmem:[%s7534_s2 + $0x1b0] sm:$0xf0] }
  0x43   :  { %1903 = vmatpush.bf16.msra.mxu2 %v4160_v3  ;;  %1916 = vmatpush.bf16.msra.mxu3 %v4288_v4  ;;  %v4239_v32 = vld [vmem:[%s7534_s2 + $0x760] sm:$0xf]  ;;  %v4112_v33 = vor.u32 %v4979_v31, %v4111_v30  ;;  %v5011_v34 = vld [vmem:[%s7534_s2 + $0x76c] sm:$0xf0]  ;;  %v4789_v31 = vld [vmem:[%s7534_s2 + $0x84] sm:$0xf] }
  0x44   :  { %1880 = vmatpush.bf16.msra.mxu0 %v3856_v61  ;;  %1893 = vmatpush.bf16.msra.mxu1 %v3984_v62  ;;  %v4240_v35 = vor.u32 %v5011_v34, %v4239_v32  ;;  %v4095_v36 = vld [vmem:[%s7534_s2 + $0x640] sm:$0xf]  ;;  %v4975_v38 = vld [vmem:[%s7534_s2 + $0x64c] sm:$0xf0]  ;;  %v3361_v32 = vld [vmem:[%s7534_s2 + $0x90] sm:$0xf0] }
  0x45   :  { %v4223_v39 = vld [vmem:[%s7534_s2 + $0x740] sm:$0xf]  ;;  %v4096_v40 = vor.u32 %v4975_v38, %v4095_v36  ;;  %v5007_v41 = vld [vmem:[%s7534_s2 + $0x74c] sm:$0xf0]  ;;  %v3489_v34 = vld [vmem:[%s7534_s2 + $0x190] sm:$0xf0] }
  0x46   :  { %v4224_v42 = vor.u32 %v5007_v41, %v4223_v39  ;;  %v4079_v43 = vld [vmem:[%s7534_s2 + $0x620] sm:$0xf]  ;;  %v4971_v44 = vld [vmem:[%s7534_s2 + $0x62c] sm:$0xf0]  ;;  %v4813_v1 = vld [vmem:[%s7534_s2 + $0x144] sm:$0xf] }
  0x47   :  { %1904 = vmatpush.bf16.msra.mxu2 %v4144_v17  ;;  %1917 = vmatpush.bf16.msra.mxu3 %v4272_v18  ;;  %v4207_v45 = vld [vmem:[%s7534_s2 + $0x720] sm:$0xf]  ;;  %v5003_v46 = vld [vmem:[%s7534_s2 + $0x72c] sm:$0xf0]  ;;  %v4080_v47 = vor.u32 %v4971_v44, %v4079_v43  ;;  %v3396_v18 = vor.u32 %v4797_v8, %v3393_v11  ;;  %v4785_v44 = vld [vmem:[%s7534_s2 + $0x64] sm:$0xf] }
  0x48   :  { %1881 = vmatpush.bf16.msra.mxu0 %v3840_v5  ;;  %1894 = vmatpush.bf16.msra.mxu1 %v3968_v6  ;;  %v4208_v48 = vor.u32 %v5003_v46, %v4207_v45  ;;  %v4063_v49 = vld [vmem:[%s7534_s2 + $0x600] sm:$0xf]  ;;  %v4967_v50 = vld [vmem:[%s7534_s2 + $0x60c] sm:$0xf0]  ;;  %v3412_v6 = vor.u32 %v4801_v60, %v3409_v63  ;;  %v3345_v45 = vld [vmem:[%s7534_s2 + $0x70] sm:$0xf0] }
  0x49   :  { %v4191_v51 = vld [vmem:[%s7534_s2 + $0x700] sm:$0xf]  ;;  %v4064_v52 = vor.u32 %v4967_v50, %v4063_v49  ;;  %v4999_v53 = vld [vmem:[%s7534_s2 + $0x70c] sm:$0xf0]  ;;  %v4817_v46 = vld [vmem:[%s7534_s2 + $0x164] sm:$0xf] }
  0x4a   :  { %v4192_v54 = vor.u32 %v4999_v53, %v4191_v51  ;;  %v5706_v55 = vld [vmem:[%s7541_s9] sm:$0xff]  ;;  %v3665_v49 = vld [vmem:[%s7534_s2 + $0x2f0] sm:$0xf0] }
  0x4b   :  { %1905 = vmatpush.bf16.msra.mxu2 %v4128_v26  ;;  %1918 = vmatpush.bf16.msra.mxu3 %v4256_v29  ;;  %v53_v56 = vperm.slane %v5706_v55, 0  ;;  %v54_v57 = vperm.slane %v5706_v55, 1  ;;  %v58_v22 = vperm.slane %v5706_v55, 5  ;;  %v3508_v26 = vor.u32 %v4825_v20, %v3505_v37  ;;  %v3793_v53 = vld [vmem:[%s7534_s2 + $0x3f0] sm:$0xf0] }
  0x4c   :  { %1882 = vmatpush.bf16.msra.mxu0 %v3824_v9  ;;  %1895 = vmatpush.bf16.msra.mxu1 %v3952_v13  ;;  %v3521_v13 = vld [vmem:[%s7534_s2 + $0x1d0] sm:$0xf0]  ;;  %v55_v27 = vperm.slane %v5706_v55, 2  ;;  %v56_v28 = vperm.slane %v5706_v55, 3  ;;  %v4889_v37 = vld [vmem:[%s7534_s2 + $0x3a4] sm:$0xf] }
  0x4d   :  { %v3524_v19 = vor.u32 %v4829_v12, %v3521_v13  ;;  %v4777_v13 = vld [vmem:[%s7534_s2 + $0x24] sm:$0xf]  ;;  %v3633_v20 = vld [vmem:[%s7534_s2 + $0x2b0] sm:$0xf0] }
  0x4f   :  { %1906 = vmatpush.bf16.msra.mxu2 %v4112_v33  ;;  %1919 = vmatpush.bf16.msra.mxu3 %v4240_v35  ;;  %v4821_v33 = vld [vmem:[%s7534_s2 + $0x184] sm:$0xf] }
  0x50   :  { %1883 = vmatpush.bf16.msra.mxu0 %v3808_v21  ;;  %1896 = vmatpush.bf16.msra.mxu1 %v3936_v25  ;;  %v57_v21 = vperm.slane %v5706_v55, 4  ;;  %v3380_v25 = vor.u32 %v4793_v14, %v3377_v15  ;;  %v3492_v41 = vor.u32 %v4821_v33, %v3489_v34  ;;  %v3313_v14 = vld [vmem:[%s7534_s2 + $0x30] sm:$0xf0]  ;;  %v4885_v33 = vld [vmem:[%s7534_s2 + $0x384] sm:$0xf] }
  0x51   :  { %v3745_v34 = vld [vmem:[%s7534_s2 + $0x390] sm:$0xf0] }
  0x53   :  { %1907 = vmatpush.bf16.msra.mxu2 %v4096_v40  ;;  %1920 = vmatpush.bf16.msra.mxu3 %v4224_v42  ;;  %v3364_v40 = vor.u32 %v4789_v31, %v3361_v32  ;;  %v4853_v31 = vld [vmem:[%s7534_s2 + $0x284] sm:$0xf]  ;;  %v3617_v32 = vld [vmem:[%s7534_s2 + $0x290] sm:$0xf0] }
  0x57   :  { %1908 = vmatpush.bf16.msra.mxu2 %v4080_v47  ;;  %1921 = vmatpush.bf16.msra.mxu3 %v4208_v48  ;;  %v3473_v47 = vld [vmem:[%s7534_s2 + $0x170] sm:$0xf0]  ;;  %v4865_v48 = vld [vmem:[%s7534_s2 + $0x2e4] sm:$0xf] }
  0x58   :  { %v3476_v60 = vor.u32 %v4817_v46, %v3473_v47  ;;  %v3668_v63 = vor.u32 %v4865_v48, %v3665_v49  ;;  %v3620_v46 = vor.u32 %v4853_v31, %v3617_v32  ;;  %v3748_v47 = vor.u32 %v4885_v33, %v3745_v34  ;;  %v4849_v48 = vld [vmem:[%s7534_s2 + $0x264] sm:$0xf]  ;;  %v3601_v49 = vld [vmem:[%s7534_s2 + $0x270] sm:$0xf0] }
  0x59   :  { %v4837_v31 = vld [vmem:[%s7534_s2 + $0x204] sm:$0xf]  ;;  %v3553_v32 = vld [vmem:[%s7534_s2 + $0x210] sm:$0xf0] }
  0x5a   :  { %v4869_v33 = vld [vmem:[%s7534_s2 + $0x304] sm:$0xf] }
  0x5b   :  { %1909 = vmatpush.bf16.msra.mxu2 %v4064_v52  ;;  %1922 = vmatpush.bf16.msra.mxu3 %v4192_v54  ;;  %v4897_v52 = vld [vmem:[%s7534_s2 + $0x3e4] sm:$0xf] }
  0x5c   :  { %v3796_v0 = vor.u32 %v4897_v52, %v3793_v53 }
  0x91   :  { %v167_v58 = vpop.f32.mrf.mxu2  ;;  %v180_v59 = vpop.f32.mrf.mxu3 }
  0x92   :  { %v168_v61 = vadd.f32 %v167_v58, %v53_v56  ;;  %v181_v62 = vadd.f32 %v180_v59, %v54_v57  ;;  %v219_v2 = vpop.f32.mrf.mxu0  ;;  %v232_v3 = vpop.f32.mrf.mxu1  ;;  %v3348_v59 = vor.u32 %v4785_v44, %v3345_v45 }
  0x93   :  { %v220_v29 = vadd.f32 %v219_v2, %v57_v21  ;;  %v233_v30 = vadd.f32 %v232_v3, %v58_v22  ;;  %v3457_v2 = vld [vmem:[%s7534_s2 + $0x150] sm:$0xf0]  ;;  %v4861_v3 = vld [vmem:[%s7534_s2 + $0x2c4] sm:$0xf]  ;;  %v59_v22 = vperm.slane %v5706_v55, 6 }
  0x94   :  { %v262_v4 = vmax.f32 %v168_v61, 0.0  ;;  %v263_v5 = vmax.f32 %v181_v62, 0.0  ;;  %v4781_v61 = vld [vmem:[%s7534_s2 + $0x44] sm:$0xf]  ;;  %v3329_v62 = vld [vmem:[%s7534_s2 + $0x50] sm:$0xf0]  ;;  %v3460_v12 = vor.u32 %v4813_v1, %v3457_v2 }
  0x95   :  { %v266_v38 = vmax.f32 %v220_v29, 0.0  ;;  %v267_v39 = vmax.f32 %v233_v30, 0.0  ;;  %v3332_v11 = vor.u32 %v4781_v61, %v3329_v62  ;;  %v3761_v21 = vld [vmem:[%s7534_s2 + $0x3b0] sm:$0xf0]  ;;  %v4925_v61 = vld [vmem:[%s7534_s2 + $0x4c4] sm:$0xf] }
  0x96   :  { %v5725_v9 = vpack.c.bf16 %v262_v4, %v262_v4  ;;  %v5727_v10 = vpack.c.bf16 %v263_v5, %v263_v5  ;;  %v3649_v4 = vld [vmem:[%s7534_s2 + $0x2d0] sm:$0xf0]  ;;  %v4893_v5 = vld [vmem:[%s7534_s2 + $0x3c4] sm:$0xf] }
  0x97   :  { %v5792_v54 = vpack.c.bf16 %v266_v38, %v266_v38  ;;  %v5794_v56 = vpack.c.bf16 %v267_v39, %v267_v39  ;;  %v3652_v15 = vor.u32 %v4861_v3, %v3649_v4  ;;  %v3425_v30 = vld [vmem:[%s7534_s2 + $0x110] sm:$0xf0]  ;;  %v3604_v3 = vor.u32 %v4849_v48, %v3601_v49 }
  0x98   :  { %1832 = vmatmul.bf16.vlgmr.msrb.gmra.mxu0 %v5725_v9  ;;  %1845 = vmatmul.bf16.vlgmr.msrb.gmra.mxu1 %v5727_v10  ;;  %v3905_v62 = vld [vmem:[%s7534_s2 + $0x4d0] sm:$0xf0] }
  0x99   :  { %1928 = vmatpush.bf16.msrb.mxu0 %v3412_v6  ;;  %1941 = vmatpush.bf16.msrb.mxu1 %v3540_v7  ;;  %v169_v16 = vpop.f32.mrf.mxu2  ;;  %v182_v17 = vpop.f32.mrf.mxu3  ;;  %v3777_v6 = vld [vmem:[%s7534_s2 + $0x3d0] sm:$0xf0] }
  0x9a   :  { %v221_v23 = vpop.f32.mrf.mxu0  ;;  %v234_v24 = vpop.f32.mrf.mxu1  ;;  %v3780_v16 = vor.u32 %v4893_v5, %v3777_v6  ;;  %v4809_v17 = vld [vmem:[%s7534_s2 + $0x124] sm:$0xf]  ;;  %v3585_v6 = vld [vmem:[%s7534_s2 + $0x250] sm:$0xf0] }
  0x9b   :  { %v60_v23 = vperm.slane %v5706_v55, 7  ;;  %v3316_v24 = vor.u32 %v4777_v13, %v3313_v14  ;;  %v3764_v55 = vor.u32 %v4889_v37, %v3761_v21  ;;  %v4845_v5 = vld [vmem:[%s7534_s2 + $0x244] sm:$0xf]  ;;  %v3889_v14 = vld [vmem:[%s7534_s2 + $0x4b0] sm:$0xf0] }
  0x9c   :  { %v4921_v13 = vld [vmem:[%s7534_s2 + $0x4a4] sm:$0xf]  ;;  %v3569_v21 = vld [vmem:[%s7534_s2 + $0x230] sm:$0xf0] }
  0x9d   :  { %1929 = vmatpush.bf16.msrb.mxu0 %v3396_v18  ;;  %1942 = vmatpush.bf16.msrb.mxu1 %v3524_v19  ;;  %v3441_v18 = vld [vmem:[%s7534_s2 + $0x130] sm:$0xf0]  ;;  %v4857_v19 = vld [vmem:[%s7534_s2 + $0x2a4] sm:$0xf] }
  0x9e   :  { %v3636_v29 = vor.u32 %v4857_v19, %v3633_v20  ;;  %v3588_v19 = vor.u32 %v4845_v5, %v3585_v6  ;;  %v4841_v37 = vld [vmem:[%s7534_s2 + $0x224] sm:$0xf]  ;;  %v3825_v6 = vld [vmem:[%s7534_s2 + $0x430] sm:$0xf0] }
  0x9f   :  { %v4905_v5 = vld [vmem:[%s7534_s2 + $0x424] sm:$0xf] }
  0xa1   :  { %1930 = vmatpush.bf16.msrb.mxu0 %v3380_v25  ;;  %1943 = vmatpush.bf16.msrb.mxu1 %v3508_v26  ;;  %v193_v35 = vpop.f32.mrf.mxu2  ;;  %v206_v36 = vpop.f32.mrf.mxu3  ;;  %v3444_v25 = vor.u32 %v4809_v17, %v3441_v18  ;;  %v4773_v26 = vld [vmem:[%s7534_s2 + $0x4] sm:$0xf] }
  0xa2   :  { %v194_v42 = vadd.f32 %v193_v35, %v55_v27  ;;  %v207_v43 = vadd.f32 %v206_v36, %v56_v28  ;;  %v3297_v27 = vld [vmem:[%s7534_s2 + $0x10] sm:$0xf0]  ;;  %v4805_v28 = vld [vmem:[%s7534_s2 + $0x104] sm:$0xf] }
  0xa3   :  { %v4929_v35 = vld [vmem:[%s7534_s2 + $0x4e4] sm:$0xf]  ;;  %v3300_v39 = vor.u32 %v4773_v26, %v3297_v27  ;;  %v3428_v45 = vor.u32 %v4805_v28, %v3425_v30  ;;  %v3873_v27 = vld [vmem:[%s7534_s2 + $0x490] sm:$0xf0] }
  0xa4   :  { %v264_v50 = vmax.f32 %v194_v42, 0.0  ;;  %v265_v51 = vmax.f32 %v207_v43, 0.0  ;;  %v4049_v42 = vld [vmem:[%s7534_s2 + $0x5f0] sm:$0xf0]  ;;  %v4917_v26 = vld [vmem:[%s7534_s2 + $0x484] sm:$0xf] }
  0xa5   :  { %1931 = vmatpush.bf16.msrb.mxu0 %v3364_v40  ;;  %1944 = vmatpush.bf16.msrb.mxu1 %v3492_v41  ;;  %v3921_v40 = vld [vmem:[%s7534_s2 + $0x4f0] sm:$0xf0]  ;;  %v4961_v41 = vld [vmem:[%s7534_s2 + $0x5e4] sm:$0xf]  ;;  %v3876_v34 = vor.u32 %v4917_v26, %v3873_v27 }
  0xa6   :  { %v5796_v57 = vpack.c.bf16 %v264_v50, %v264_v50  ;;  %v5798_v58 = vpack.c.bf16 %v265_v51, %v265_v51  ;;  %v4881_v50 = vld [vmem:[%s7534_s2 + $0x364] sm:$0xf]  ;;  %v3924_v53 = vor.u32 %v4929_v35, %v3921_v40  ;;  %v4257_v27 = vld [vmem:[%s7534_s2 + $0x790] sm:$0xf0] }
  0xa7   :  { %v4949_v28 = vld [vmem:[%s7534_s2 + $0x584] sm:$0xf] }
  0xa8   :  { %1858 = vmatmul.bf16.vlgmr.msrb.gmra.mxu2 %v5796_v57  ;;  %1871 = vmatmul.bf16.vlgmr.msrb.gmra.mxu3 %v5798_v58  ;;  %v4945_v40 = vld [vmem:[%s7534_s2 + $0x564] sm:$0xf] }
  0xa9   :  { %1884 = vmatmul.bf16.vlgmr.msra.gmra.mxu0 %v5792_v54  ;;  %1897 = vmatmul.bf16.vlgmr.msra.gmra.mxu1 %v5794_v56  ;;  %v195_v7 = vpop.f32.mrf.mxu2  ;;  %v208_v8 = vpop.f32.mrf.mxu3  ;;  %v5013_v26 = vld [vmem:[%s7534_s2 + $0x784] sm:$0xf] }
  0xaa   :  { %1932 = vmatpush.bf16.msrb.mxu0 %v3348_v59  ;;  %1945 = vmatpush.bf16.msrb.mxu1 %v3476_v60  ;;  %v4052_v59 = vor.u32 %v4961_v41, %v4049_v42  ;;  %v3729_v60 = vld [vmem:[%s7534_s2 + $0x370] sm:$0xf0]  ;;  %v3908_v7 = vor.u32 %v4925_v61, %v3905_v62  ;;  %v4993_v42 = vld [vmem:[%s7534_s2 + $0x6e4] sm:$0xf] }
  0xab   :  { %1954 = vmatpush.bf16.msrb.mxu2 %v3668_v63  ;;  %1967 = vmatpush.bf16.msrb.mxu3 %v3796_v0  ;;  %v4957_v63 = vld [vmem:[%s7534_s2 + $0x5c4] sm:$0xf]  ;;  %v4033_v0 = vld [vmem:[%s7534_s2 + $0x5d0] sm:$0xf0]  ;;  %v3732_v4 = vor.u32 %v4881_v50, %v3729_v60 }
  0xac   :  { %v4036_v8 = vor.u32 %v4957_v63, %v4033_v0  ;;  %v3985_v41 = vld [vmem:[%s7534_s2 + $0x570] sm:$0xf0]  ;;  %v4909_v50 = vld [vmem:[%s7534_s2 + $0x444] sm:$0xf] }
  0xad   :  { %v3988_v49 = vor.u32 %v4945_v40, %v3985_v41  ;;  %v3969_v60 = vld [vmem:[%s7534_s2 + $0x550] sm:$0xf0]  ;;  %v4989_v61 = vld [vmem:[%s7534_s2 + $0x6c4] sm:$0xf] }
  0xae   :  { %1933 = vmatpush.bf16.msrb.mxu0 %v3332_v11  ;;  %1946 = vmatpush.bf16.msrb.mxu1 %v3460_v12  ;;  %v4877_v11 = vld [vmem:[%s7534_s2 + $0x344] sm:$0xf]  ;;  %v3713_v12 = vld [vmem:[%s7534_s2 + $0x350] sm:$0xf0] }
  0xaf   :  { %1955 = vmatpush.bf16.msrb.mxu2 %v3652_v15  ;;  %1968 = vmatpush.bf16.msrb.mxu3 %v3780_v16  ;;  %v4953_v15 = vld [vmem:[%s7534_s2 + $0x5a4] sm:$0xf]  ;;  %v4017_v16 = vld [vmem:[%s7534_s2 + $0x5b0] sm:$0xf0]  ;;  %v3716_v20 = vor.u32 %v4877_v11, %v3713_v12 }
  0xb0   :  { %v4161_v62 = vld [vmem:[%s7534_s2 + $0x6d0] sm:$0xf0]  ;;  %v5021_v63 = vld [vmem:[%s7534_s2 + $0x7c4] sm:$0xf] }
  0xb1   :  { %v245_v36 = vpop.f32.mrf.mxu2  ;;  %v258_v38 = vpop.f32.mrf.mxu3  ;;  %v4289_v0 = vld [vmem:[%s7534_s2 + $0x7d0] sm:$0xf0]  ;;  %v4937_v11 = vld [vmem:[%s7534_s2 + $0x524] sm:$0xf] }
  0xb2   :  { %1934 = vmatpush.bf16.msrb.mxu0 %v3316_v24  ;;  %1947 = vmatpush.bf16.msrb.mxu1 %v3444_v25  ;;  %v246_v43 = vadd.f32 %v245_v36, %v59_v22  ;;  %v259_v44 = vadd.f32 %v258_v38, %v60_v23  ;;  %v3892_v22 = vor.u32 %v4921_v13, %v3889_v14  ;;  %v4873_v24 = vld [vmem:[%s7534_s2 + $0x324] sm:$0xf]  ;;  %v3697_v25 = vld [vmem:[%s7534_s2 + $0x330] sm:$0xf0] }
  0xb3   :  { %1956 = vmatpush.bf16.msrb.mxu2 %v3636_v29  ;;  %1969 = vmatpush.bf16.msrb.mxu3 %v3764_v55  ;;  %v4020_v23 = vor.u32 %v4953_v15, %v4017_v16  ;;  %v4001_v29 = vld [vmem:[%s7534_s2 + $0x590] sm:$0xf0]  ;;  %v3572_v55 = vor.u32 %v4841_v37, %v3569_v21  ;;  %v3700_v30 = vor.u32 %v4873_v24, %v3697_v25  ;;  %v4913_v38 = vld [vmem:[%s7534_s2 + $0x464] sm:$0xf] }
  0xb4   :  { %v268_v51 = vmax.f32 %v246_v43, 0.0  ;;  %v269_v52 = vmax.f32 %v259_v44, 0.0  ;;  %v4004_v35 = vor.u32 %v4949_v28, %v4001_v29  ;;  %v3681_v36 = vld [vmem:[%s7534_s2 + $0x310] sm:$0xf0]  ;;  %v5025_v44 = vld [vmem:[%s7534_s2 + $0x7e4] sm:$0xf] }
  0xb5   :  { %v4177_v43 = vld [vmem:[%s7534_s2 + $0x6f0] sm:$0xf0]  ;;  %v4985_v13 = vld [vmem:[%s7534_s2 + $0x6a4] sm:$0xf]  ;;  %v3415_v28 = vld [vmem:[%s7534_s2 + $0xe8] sm:$0xf] }
  0xb6   :  { %v5914_v1 = vpack.c.bf16 %v268_v51, %v268_v51  ;;  %v5916_v2 = vpack.c.bf16 %v269_v52, %v269_v52  ;;  %1935 = vmatpush.bf16.msrb.mxu0 %v3300_v39  ;;  %1948 = vmatpush.bf16.msrb.mxu1 %v3428_v45  ;;  %v3857_v39 = vld [vmem:[%s7534_s2 + $0x470] sm:$0xf0]  ;;  %v4180_v52 = vor.u32 %v4993_v42, %v4177_v43  ;;  %v5017_v15 = vld [vmem:[%s7534_s2 + $0x7a4] sm:$0xf]  ;;  %v4804_v29 = vld [vmem:[%s7534_s2 + $0xf4] sm:$0xf0] }
  0xb7   :  { %1957 = vmatpush.bf16.msrb.mxu2 %v3620_v46  ;;  %1970 = vmatpush.bf16.msrb.mxu3 %v3748_v47  ;;  %v4305_v45 = vld [vmem:[%s7534_s2 + $0x7f0] sm:$0xf0]  ;;  %v3556_v46 = vor.u32 %v4837_v31, %v3553_v32  ;;  %v3684_v47 = vor.u32 %v4869_v33, %v3681_v36  ;;  %v3860_v48 = vor.u32 %v4913_v38, %v3857_v39  ;;  %v4933_v37 = vld [vmem:[%s7534_s2 + $0x504] sm:$0xf]  ;;  %v3399_v42 = vld [vmem:[%s7534_s2 + $0xc8] sm:$0xf] }
  0xb8   :  { %1910 = vmatmul.bf16.vlgmr.msra.gmra.mxu2 %v5914_v1  ;;  %1923 = vmatmul.bf16.vlgmr.msra.gmra.mxu3 %v5916_v2  ;;  %v3841_v51 = vld [vmem:[%s7534_s2 + $0x450] sm:$0xf0]  ;;  %v4981_v24 = vld [vmem:[%s7534_s2 + $0x684] sm:$0xf]  ;;  %v3416_v38 = vor.u32 %v4804_v29, %v3415_v28  ;;  %v4800_v43 = vld [vmem:[%s7534_s2 + $0xd4] sm:$0xf0] }
  0xb9   :  { %v247_v17 = vpop.f32.mrf.mxu2  ;;  %v260_v18 = vpop.f32.mrf.mxu3  ;;  %1936 = vmatmul.bf16.vlgmr.msrb.gmra.mxu0 %v5725_v9  ;;  %1949 = vmatmul.bf16.vlgmr.msrb.gmra.mxu1 %v5727_v10  ;;  %v3953_v12 = vld [vmem:[%s7534_s2 + $0x530] sm:$0xf0]  ;;  %v5009_v40 = vld [vmem:[%s7534_s2 + $0x764] sm:$0xf]  ;;  %v3799_v28 = vld [vmem:[%s7534_s2 + $0x3e8] sm:$0xf] }
  0xba   :  { %1980 = vmatpush.bf16.msra.mxu0 %v3924_v53  ;;  %1993 = vmatpush.bf16.msra.mxu1 %v4052_v59  ;;  %v4308_v53 = vor.u32 %v5025_v44, %v4305_v45  ;;  %v4941_v59 = vld [vmem:[%s7534_s2 + $0x544] sm:$0xf]  ;;  %v4145_v14 = vld [vmem:[%s7534_s2 + $0x6b0] sm:$0xf0]  ;;  %v3828_v17 = vor.u32 %v4905_v5, %v3825_v6  ;;  %v3956_v18 = vor.u32 %v4937_v11, %v3953_v12  ;;  %v3527_v44 = vld [vmem:[%s7534_s2 + $0x1c8] sm:$0xf] }
  0xbb   :  { %1958 = vmatpush.bf16.msrb.mxu2 %v3604_v3  ;;  %1971 = vmatpush.bf16.msrb.mxu3 %v3732_v4  ;;  %v3844_v3 = vor.u32 %v4909_v50, %v3841_v51  ;;  %v3972_v4 = vor.u32 %v4941_v59, %v3969_v60  ;;  %v4273_v16 = vld [vmem:[%s7534_s2 + $0x7b0] sm:$0xf0]  ;;  %v4148_v21 = vor.u32 %v4985_v13, %v4145_v14  ;;  %v4832_v45 = vld [vmem:[%s7534_s2 + $0x1d4] sm:$0xf0]  ;;  %v3383_v59 = vld [vmem:[%s7534_s2 + $0xa8] sm:$0xf] }
  0xbc   :  { %v4129_v25 = vld [vmem:[%s7534_s2 + $0x690] sm:$0xf0]  ;;  %v3400_v50 = vor.u32 %v4800_v43, %v3399_v42  ;;  %v3528_v51 = vor.u32 %v4832_v45, %v3527_v44  ;;  %v4796_v60 = vld [vmem:[%s7534_s2 + $0xb4] sm:$0xf0]  ;;  %v3367_v11 = vld [vmem:[%s7534_s2 + $0x88] sm:$0xf] }
  0xbd   :  { %v4132_v33 = vor.u32 %v4981_v24, %v4129_v25  ;;  %v4113_v36 = vld [vmem:[%s7534_s2 + $0x670] sm:$0xf0]  ;;  %v3384_v5 = vor.u32 %v4796_v60, %v3383_v59  ;;  %v4792_v12 = vld [vmem:[%s7534_s2 + $0x94] sm:$0xf0]  ;;  %v3495_v13 = vld [vmem:[%s7534_s2 + $0x188] sm:$0xf] }
  0xbe   :  { %1981 = vmatpush.bf16.msra.mxu0 %v3908_v7  ;;  %1994 = vmatpush.bf16.msra.mxu1 %v4036_v8  ;;  %v4164_v7 = vor.u32 %v4989_v61, %v4161_v62  ;;  %v4292_v8 = vor.u32 %v5021_v63, %v4289_v0  ;;  %v4241_v41 = vld [vmem:[%s7534_s2 + $0x770] sm:$0xf0]  ;;  %v3511_v61 = vld [vmem:[%s7534_s2 + $0x1a8] sm:$0xf]  ;;  %v4828_v62 = vld [vmem:[%s7534_s2 + $0x1b4] sm:$0xf0] }
  0xbf   :  { %1959 = vmatpush.bf16.msrb.mxu2 %v3588_v19  ;;  %1972 = vmatpush.bf16.msrb.mxu3 %v3716_v20  ;;  %v4901_v19 = vld [vmem:[%s7534_s2 + $0x404] sm:$0xf]  ;;  %v3809_v20 = vld [vmem:[%s7534_s2 + $0x410] sm:$0xf0]  ;;  %v3512_v6 = vor.u32 %v4828_v62, %v3511_v61  ;;  %v4824_v14 = vld [vmem:[%s7534_s2 + $0x194] sm:$0xf0] }
  0xc0   :  { %v3812_v31 = vor.u32 %v4901_v19, %v3809_v20  ;;  %v4997_v19 = vld [vmem:[%s7534_s2 + $0x704] sm:$0xf]  ;;  %v3368_v20 = vor.u32 %v4792_v12, %v3367_v11  ;;  %v3479_v24 = vld [vmem:[%s7534_s2 + $0x168] sm:$0xf]  ;;  %v4820_v25 = vld [vmem:[%s7534_s2 + $0x174] sm:$0xf0] }
  0xc1   :  { %v4900_v29 = vld [vmem:[%s7534_s2 + $0x3f4] sm:$0xf0]  ;;  %v3783_v42 = vld [vmem:[%s7534_s2 + $0x3c8] sm:$0xf] }
  0xc2   :  { %1982 = vmatpush.bf16.msra.mxu0 %v3892_v22  ;;  %1995 = vmatpush.bf16.msra.mxu1 %v4020_v23  ;;  %v4276_v22 = vor.u32 %v5017_v15, %v4273_v16  ;;  %v3937_v23 = vld [vmem:[%s7534_s2 + $0x510] sm:$0xf0]  ;;  %v4896_v43 = vld [vmem:[%s7534_s2 + $0x3d4] sm:$0xf0]  ;;  %v3767_v59 = vld [vmem:[%s7534_s2 + $0x3a8] sm:$0xf] }
  0xc3   :  { %1960 = vmatpush.bf16.msrb.mxu2 %v3572_v55  ;;  %1973 = vmatpush.bf16.msrb.mxu3 %v3700_v30  ;;  %v3543_v55 = vld [vmem:[%s7534_s2 + $0x1e8] sm:$0xf]  ;;  %v4836_v30 = vld [vmem:[%s7534_s2 + $0x1f4] sm:$0xf0]  ;;  %v3940_v32 = vor.u32 %v4933_v37, %v3937_v23  ;;  %v3496_v37 = vor.u32 %v4824_v14, %v3495_v13 }
  0xc4   :  { %v3544_v39 = vor.u32 %v4836_v30, %v3543_v55  ;;  %v4788_v23 = vld [vmem:[%s7534_s2 + $0x74] sm:$0xf0]  ;;  %v3751_v11 = vld [vmem:[%s7534_s2 + $0x388] sm:$0xf] }
  0xc5   :  { %v4892_v60 = vld [vmem:[%s7534_s2 + $0x3b4] sm:$0xf0]  ;;  %v3927_v13 = vld [vmem:[%s7534_s2 + $0x4e8] sm:$0xf] }
  0xc6   :  { %1983 = vmatpush.bf16.msra.mxu0 %v3876_v34  ;;  %1996 = vmatpush.bf16.msra.mxu1 %v4004_v35  ;;  %v4260_v34 = vor.u32 %v5013_v26, %v4257_v27  ;;  %v4977_v35 = vld [vmem:[%s7534_s2 + $0x664] sm:$0xf]  ;;  %v3671_v26 = vld [vmem:[%s7534_s2 + $0x2e8] sm:$0xf]  ;;  %v4868_v27 = vld [vmem:[%s7534_s2 + $0x2f4] sm:$0xf0] }
  0xc7   :  { %1961 = vmatpush.bf16.msrb.mxu2 %v3556_v46  ;;  %1974 = vmatpush.bf16.msrb.mxu3 %v3684_v47  ;;  %v4116_v46 = vor.u32 %v4977_v35, %v4113_v36  ;;  %v4244_v47 = vor.u32 %v5009_v40, %v4241_v41  ;;  %v3672_v35 = vor.u32 %v4868_v27, %v3671_v26  ;;  %v3655_v40 = vld [vmem:[%s7534_s2 + $0x2c8] sm:$0xf]  ;;  %v4864_v41 = vld [vmem:[%s7534_s2 + $0x2d4] sm:$0xf0] }
  0xc8   :  { %v3800_v36 = vor.u32 %v4900_v29, %v3799_v28  ;;  %v4888_v12 = vld [vmem:[%s7534_s2 + $0x394] sm:$0xf0]  ;;  %v3911_v26 = vld [vmem:[%s7534_s2 + $0x4c8] sm:$0xf] }
  0xc9   :  { %v4932_v14 = vld [vmem:[%s7534_s2 + $0x4f4] sm:$0xf0]  ;;  %v4039_v28 = vld [vmem:[%s7534_s2 + $0x5c8] sm:$0xf] }
  0xca   :  { %1984 = vmatpush.bf16.msra.mxu0 %v3860_v48  ;;  %1997 = vmatpush.bf16.msra.mxu1 %v3988_v49  ;;  %v4973_v48 = vld [vmem:[%s7534_s2 + $0x644] sm:$0xf]  ;;  %v4097_v49 = vld [vmem:[%s7534_s2 + $0x650] sm:$0xf0]  ;;  %v4928_v27 = vld [vmem:[%s7534_s2 + $0x4d4] sm:$0xf0] }
  0xcb   :  { %2006 = vmatpush.bf16.msra.mxu2 %v4180_v52  ;;  %2019 = vmatpush.bf16.msra.mxu3 %v4308_v53  ;;  %v5005_v52 = vld [vmem:[%s7534_s2 + $0x744] sm:$0xf]  ;;  %v4225_v53 = vld [vmem:[%s7534_s2 + $0x750] sm:$0xf0]  ;;  %v4100_v63 = vor.u32 %v4973_v48, %v4097_v49  ;;  %v3656_v48 = vor.u32 %v4864_v41, %v3655_v40  ;;  %v3784_v49 = vor.u32 %v4896_v43, %v3783_v42  ;;  %v4960_v29 = vld [vmem:[%s7534_s2 + $0x5d4] sm:$0xf0] }
  0xcc   :  { %1962 = vmatmul.bf16.vlgmr.msrb.gmra.mxu2 %v5796_v57  ;;  %1975 = vmatmul.bf16.vlgmr.msrb.gmra.mxu3 %v5798_v58  ;;  %v4228_v0 = vor.u32 %v5005_v52, %v4225_v53  ;;  %v3639_v52 = vld [vmem:[%s7534_s2 + $0x2a8] sm:$0xf]  ;;  %v4860_v53 = vld [vmem:[%s7534_s2 + $0x2b4] sm:$0xf0] }
  0xcd   :  { %v4023_v40 = vld [vmem:[%s7534_s2 + $0x5a8] sm:$0xf]  ;;  %v4956_v41 = vld [vmem:[%s7534_s2 + $0x5b4] sm:$0xf0] }
  0xce   :  { %1985 = vmatpush.bf16.msra.mxu0 %v3844_v3  ;;  %1998 = vmatpush.bf16.msra.mxu1 %v3972_v4  ;;  %v4969_v3 = vld [vmem:[%s7534_s2 + $0x624] sm:$0xf]  ;;  %v4081_v4 = vld [vmem:[%s7534_s2 + $0x630] sm:$0xf0] }
  0xcf   :  { %2007 = vmatpush.bf16.msra.mxu2 %v4164_v7  ;;  %2020 = vmatpush.bf16.msra.mxu3 %v4292_v8  ;;  %v5001_v7 = vld [vmem:[%s7534_s2 + $0x724] sm:$0xf]  ;;  %v4209_v8 = vld [vmem:[%s7534_s2 + $0x730] sm:$0xf0]  ;;  %v4084_v15 = vor.u32 %v4969_v3, %v4081_v4  ;;  %v3431_v3 = vld [vmem:[%s7534_s2 + $0x108] sm:$0xf]  ;;  %v3640_v4 = vor.u32 %v4860_v53, %v3639_v52 }
  0xd0   :  { %v4212_v16 = vor.u32 %v5001_v7, %v4209_v8  ;;  %v3623_v7 = vld [vmem:[%s7534_s2 + $0x288] sm:$0xf]  ;;  %v4856_v8 = vld [vmem:[%s7534_s2 + $0x294] sm:$0xf0] }
  0xd1   :  { %v4007_v52 = vld [vmem:[%s7534_s2 + $0x588] sm:$0xf]  ;;  %v4952_v53 = vld [vmem:[%s7534_s2 + $0x594] sm:$0xf0] }
  0xd2   :  { %1986 = vmatpush.bf16.msra.mxu0 %v3828_v17  ;;  %1999 = vmatpush.bf16.msra.mxu1 %v3956_v18  ;;  %v4965_v17 = vld [vmem:[%s7534_s2 + $0x604] sm:$0xf]  ;;  %v4065_v18 = vld [vmem:[%s7534_s2 + $0x610] sm:$0xf0] }
  0xd3   :  { %2008 = vmatpush.bf16.msra.mxu2 %v4148_v21  ;;  %2021 = vmatpush.bf16.msra.mxu3 %v4276_v22  ;;  %v4193_v21 = vld [vmem:[%s7534_s2 + $0x710] sm:$0xf0]  ;;  %v3351_v22 = vld [vmem:[%s7534_s2 + $0x68] sm:$0xf]  ;;  %v4068_v55 = vor.u32 %v4965_v17, %v4065_v18 }
  0xd4   :  { %v4196_v30 = vor.u32 %v4997_v19, %v4193_v21  ;;  %v3624_v19 = vor.u32 %v4856_v8, %v3623_v7  ;;  %v4852_v21 = vld [vmem:[%s7534_s2 + $0x274] sm:$0xf0]  ;;  %v3991_v7 = vld [vmem:[%s7534_s2 + $0x568] sm:$0xf] }
  0xd5   :  { %v4948_v8 = vld [vmem:[%s7534_s2 + $0x574] sm:$0xf0] }
  0xd6   :  { %1987 = vmatpush.bf16.msra.mxu0 %v3812_v31  ;;  %2000 = vmatpush.bf16.msra.mxu1 %v3940_v32  ;;  %v3352_v31 = vor.u32 %v4788_v23, %v3351_v22  ;;  %v3480_v32 = vor.u32 %v4820_v25, %v3479_v24  ;;  %v3928_v22 = vor.u32 %v4932_v14, %v3927_v13  ;;  %v3735_v24 = vld [vmem:[%s7534_s2 + $0x368] sm:$0xf]  ;;  %v4884_v25 = vld [vmem:[%s7534_s2 + $0x374] sm:$0xf0] }
  0xd7   :  { %2009 = vmatpush.bf16.msra.mxu2 %v4132_v33  ;;  %2022 = vmatpush.bf16.msra.mxu3 %v4260_v34  ;;  %v3335_v33 = vld [vmem:[%s7534_s2 + $0x48] sm:$0xf]  ;;  %v4784_v34 = vld [vmem:[%s7534_s2 + $0x54] sm:$0xf0] }
  0xd8   :  { %v3336_v44 = vor.u32 %v4784_v34, %v3335_v33  ;;  %v3912_v33 = vor.u32 %v4928_v27, %v3911_v26  ;;  %v4040_v34 = vor.u32 %v4960_v29, %v4039_v28  ;;  %v4311_v13 = vld [vmem:[%s7534_s2 + $0x7e8] sm:$0xf]  ;;  %v5028_v14 = vld [vmem:[%s7534_s2 + $0x7f4] sm:$0xf0] }
  0xd9   :  { %1988 = vmatmul.bf16.vlgmr.msra.gmra.mxu0 %v5792_v54  ;;  %2001 = vmatmul.bf16.vlgmr.msra.gmra.mxu1 %v5794_v56  ;;  %v4295_v26 = vld [vmem:[%s7534_s2 + $0x7c8] sm:$0xf]  ;;  %v5024_v27 = vld [vmem:[%s7534_s2 + $0x7d4] sm:$0xf0] }
  0xda   :  { %2032 = vmatpush.bf16.msrb.mxu0 %v3416_v38  ;;  %2045 = vmatpush.bf16.msrb.mxu1 %v3544_v39  ;;  %v3463_v38 = vld [vmem:[%s7534_s2 + $0x148] sm:$0xf]  ;;  %v4816_v39 = vld [vmem:[%s7534_s2 + $0x154] sm:$0xf0] }
  0xdb   :  { %2010 = vmatpush.bf16.msra.mxu2 %v4116_v46  ;;  %2023 = vmatpush.bf16.msra.mxu3 %v4244_v47  ;;  %v3464_v45 = vor.u32 %v4816_v39, %v3463_v38  ;;  %v3319_v46 = vld [vmem:[%s7534_s2 + $0x28] sm:$0xf]  ;;  %v4780_v47 = vld [vmem:[%s7534_s2 + $0x34] sm:$0xf0] }
  0xdc   :  { %v3320_v61 = vor.u32 %v4780_v47, %v3319_v46  ;;  %v3895_v38 = vld [vmem:[%s7534_s2 + $0x4a8] sm:$0xf]  ;;  %v4924_v39 = vld [vmem:[%s7534_s2 + $0x4b4] sm:$0xf0]  ;;  %v4024_v47 = vor.u32 %v4956_v41, %v4023_v40 }
  0xdd   :  { %v3896_v46 = vor.u32 %v4924_v39, %v3895_v38  ;;  %v4279_v38 = vld [vmem:[%s7534_s2 + $0x7a8] sm:$0xf]  ;;  %v5020_v39 = vld [vmem:[%s7534_s2 + $0x7b4] sm:$0xf0] }
  0xde   :  { %2033 = vmatpush.bf16.msrb.mxu0 %v3400_v50  ;;  %2046 = vmatpush.bf16.msrb.mxu1 %v3528_v51  ;;  %v3447_v50 = vld [vmem:[%s7534_s2 + $0x128] sm:$0xf]  ;;  %v4812_v51 = vld [vmem:[%s7534_s2 + $0x134] sm:$0xf0] }
  0xdf   :  { %2011 = vmatpush.bf16.msra.mxu2 %v4100_v63  ;;  %2024 = vmatpush.bf16.msra.mxu3 %v4228_v0  ;;  %v3448_v62 = vor.u32 %v4812_v51, %v3447_v50  ;;  %v3303_v63 = vld [vmem:[%s7534_s2 + $0x8] sm:$0xf]  ;;  %v4776_v0 = vld [vmem:[%s7534_s2 + $0x14] sm:$0xf0] }
  0xe0   :  { %v3304_v17 = vor.u32 %v4776_v0, %v3303_v63  ;;  %v3879_v50 = vld [vmem:[%s7534_s2 + $0x488] sm:$0xf]  ;;  %v4920_v51 = vld [vmem:[%s7534_s2 + $0x494] sm:$0xf0] }
  0xe1   :  { %v3687_v63 = vld [vmem:[%s7534_s2 + $0x308] sm:$0xf]  ;;  %v3880_v0 = vor.u32 %v4920_v51, %v3879_v50  ;;  %v5016_v51 = vld [vmem:[%s7534_s2 + $0x794] sm:$0xf0] }
  0xe2   :  { %2034 = vmatpush.bf16.msrb.mxu0 %v3384_v5  ;;  %2047 = vmatpush.bf16.msrb.mxu1 %v3512_v6  ;;  %v3768_v5 = vor.u32 %v4892_v60, %v3767_v59  ;;  %v4808_v6 = vld [vmem:[%s7534_s2 + $0x114] sm:$0xf0]  ;;  %v4263_v50 = vld [vmem:[%s7534_s2 + $0x788] sm:$0xf] }
  0xe3   :  { %2012 = vmatpush.bf16.msra.mxu2 %v4084_v15  ;;  %2025 = vmatpush.bf16.msra.mxu3 %v4212_v16  ;;  %v4055_v15 = vld [vmem:[%s7534_s2 + $0x5e8] sm:$0xf]  ;;  %v4964_v16 = vld [vmem:[%s7534_s2 + $0x5f4] sm:$0xf0]  ;;  %v3432_v18 = vor.u32 %v4808_v6, %v3431_v3  ;;  %v4008_v3 = vor.u32 %v4952_v53, %v4007_v52  ;;  %v4802_v52 = vld [vmem:[%s7534_s2 + $0xec] sm:$0xf] }
  0xe4   :  { %v4056_v23 = vor.u32 %v4964_v16, %v4055_v15  ;;  %v4916_v6 = vld [vmem:[%s7534_s2 + $0x474] sm:$0xf0]  ;;  %v3417_v53 = vld [vmem:[%s7534_s2 + $0xf8] sm:$0xf0] }
  0xe6   :  { %2035 = vmatpush.bf16.msrb.mxu0 %v3368_v20  ;;  %2048 = vmatpush.bf16.msrb.mxu1 %v3496_v37  ;;  %v3752_v20 = vor.u32 %v4888_v12, %v3751_v11  ;;  %v3607_v37 = vld [vmem:[%s7534_s2 + $0x268] sm:$0xf]  ;;  %v4996_v12 = vld [vmem:[%s7534_s2 + $0x6f4] sm:$0xf0] }
  0xe7   :  { %2013 = vmatpush.bf16.msra.mxu2 %v4068_v55  ;;  %2026 = vmatpush.bf16.msra.mxu3 %v4196_v30  ;;  %v3608_v55 = vor.u32 %v4852_v21, %v3607_v37  ;;  %v3736_v30 = vor.u32 %v4884_v25, %v3735_v24  ;;  %v4183_v11 = vld [vmem:[%s7534_s2 + $0x6e8] sm:$0xf]  ;;  %v4312_v21 = vor.u32 %v5028_v14, %v4311_v13  ;;  %v4992_v25 = vld [vmem:[%s7534_s2 + $0x6d4] sm:$0xf0]  ;;  %v4830_v13 = vld [vmem:[%s7534_s2 + $0x1cc] sm:$0xf] }
  0xe8   :  { %v4184_v37 = vor.u32 %v4996_v12, %v4183_v11  ;;  %v4167_v24 = vld [vmem:[%s7534_s2 + $0x6c8] sm:$0xf]  ;;  %v4798_v11 = vld [vmem:[%s7534_s2 + $0xcc] sm:$0xf]  ;;  %v3401_v12 = vld [vmem:[%s7534_s2 + $0xd8] sm:$0xf0] }
  0xe9   :  { %v3529_v14 = vld [vmem:[%s7534_s2 + $0x1d8] sm:$0xf0] }
  0xea   :  { %2036 = vmatpush.bf16.msrb.mxu0 %v3352_v31  ;;  %2049 = vmatpush.bf16.msrb.mxu1 %v3480_v32  ;;  %v3591_v31 = vld [vmem:[%s7534_s2 + $0x248] sm:$0xf]  ;;  %v4848_v32 = vld [vmem:[%s7534_s2 + $0x254] sm:$0xf0] }
  0xeb   :  { %2058 = vmatpush.bf16.msrb.mxu2 %v3672_v35  ;;  %2071 = vmatpush.bf16.msrb.mxu3 %v3800_v36  ;;  %v3719_v35 = vld [vmem:[%s7534_s2 + $0x348] sm:$0xf]  ;;  %v4880_v36 = vld [vmem:[%s7534_s2 + $0x354] sm:$0xf0]  ;;  %v3592_v42 = vor.u32 %v4848_v32, %v3591_v31  ;;  %v4168_v31 = vor.u32 %v4992_v25, %v4167_v24  ;;  %v4296_v32 = vor.u32 %v5024_v27, %v4295_v26  ;;  %v3385_v25 = vld [vmem:[%s7534_s2 + $0xb8] sm:$0xf0] }
  0xec   :  { %2014 = vmatmul.bf16.vlgmr.msra.gmra.mxu2 %v5914_v1  ;;  %2027 = vmatmul.bf16.vlgmr.msra.gmra.mxu3 %v5916_v2  ;;  %v3720_v43 = vor.u32 %v4880_v36, %v3719_v35  ;;  %v4151_v35 = vld [vmem:[%s7534_s2 + $0x6a8] sm:$0xf]  ;;  %v4988_v36 = vld [vmem:[%s7534_s2 + $0x6b4] sm:$0xf0]  ;;  %v4826_v26 = vld [vmem:[%s7534_s2 + $0x1ac] sm:$0xf] }
  0xed   :  { %v3513_v27 = vld [vmem:[%s7534_s2 + $0x1b8] sm:$0xf0] }
  0xee   :  { %2037 = vmatpush.bf16.msrb.mxu0 %v3336_v44  ;;  %2050 = vmatpush.bf16.msrb.mxu1 %v3464_v45  ;;  %v3575_v44 = vld [vmem:[%s7534_s2 + $0x228] sm:$0xf]  ;;  %v4844_v45 = vld [vmem:[%s7534_s2 + $0x234] sm:$0xf0] }
  0xef   :  { %2059 = vmatpush.bf16.msrb.mxu2 %v3656_v48  ;;  %2072 = vmatpush.bf16.msrb.mxu3 %v3784_v49  ;;  %v3703_v48 = vld [vmem:[%s7534_s2 + $0x328] sm:$0xf]  ;;  %v4876_v49 = vld [vmem:[%s7534_s2 + $0x334] sm:$0xf0]  ;;  %v3576_v59 = vor.u32 %v4844_v45, %v3575_v44  ;;  %v4152_v45 = vor.u32 %v4988_v36, %v4151_v35 }
  0xf0   :  { %v3704_v60 = vor.u32 %v4876_v49, %v3703_v48  ;;  %v3943_v44 = vld [vmem:[%s7534_s2 + $0x508] sm:$0xf]  ;;  %v4984_v49 = vld [vmem:[%s7534_s2 + $0x694] sm:$0xf0] }
  0xf1   :  { %v4135_v48 = vld [vmem:[%s7534_s2 + $0x688] sm:$0xf] }
  0xf2   :  { %2038 = vmatpush.bf16.msrb.mxu0 %v3320_v61  ;;  %2051 = vmatpush.bf16.msrb.mxu1 %v3448_v62  ;;  %v3559_v61 = vld [vmem:[%s7534_s2 + $0x208] sm:$0xf]  ;;  %v4840_v62 = vld [vmem:[%s7534_s2 + $0x214] sm:$0xf0] }
  0xf3   :  { %2060 = vmatpush.bf16.msrb.mxu2 %v3640_v4  ;;  %2073 = vmatpush.bf16.msrb.mxu3 %v3768_v5  ;;  %v4872_v4 = vld [vmem:[%s7534_s2 + $0x314] sm:$0xf0]  ;;  %v3863_v5 = vld [vmem:[%s7534_s2 + $0x468] sm:$0xf]  ;;  %v3560_v15 = vor.u32 %v4840_v62, %v3559_v61 }
  0xf4   :  { %v3688_v16 = vor.u32 %v4872_v4, %v3687_v63  ;;  %v4136_v63 = vor.u32 %v4984_v49, %v4135_v48  ;;  %v4980_v4 = vld [vmem:[%s7534_s2 + $0x674] sm:$0xf0]  ;;  %v4215_v36 = vld [vmem:[%s7534_s2 + $0x728] sm:$0xf] }
  0xf5   :  { %v4199_v48 = vld [vmem:[%s7534_s2 + $0x708] sm:$0xf] }
  0xf6   :  { %2039 = vmatpush.bf16.msrb.mxu0 %v3304_v17  ;;  %2052 = vmatpush.bf16.msrb.mxu1 %v3432_v18  ;;  %v3864_v17 = vor.u32 %v4916_v6, %v3863_v5  ;;  %v3992_v18 = vor.u32 %v4948_v8, %v3991_v7  ;;  %v4247_v5 = vld [vmem:[%s7534_s2 + $0x768] sm:$0xf]  ;;  %v3420_v6 = vor.u32 %v4802_v52, %v3417_v53  ;;  %v5012_v8 = vld [vmem:[%s7534_s2 + $0x774] sm:$0xf0]  ;;  %v4786_v52 = vld [vmem:[%s7534_s2 + $0x6c] sm:$0xf] }
  0xf7   :  { %2061 = vmatpush.bf16.msrb.mxu2 %v3624_v19  ;;  %2074 = vmatpush.bf16.msrb.mxu3 %v3752_v20  ;;  %v3847_v19 = vld [vmem:[%s7534_s2 + $0x448] sm:$0xf]  ;;  %v4912_v20 = vld [vmem:[%s7534_s2 + $0x454] sm:$0xf0]  ;;  %v3353_v53 = vld [vmem:[%s7534_s2 + $0x78] sm:$0xf0] }
  0xf8   :  { %v3848_v28 = vor.u32 %v4912_v20, %v3847_v19  ;;  %v4976_v19 = vld [vmem:[%s7534_s2 + $0x654] sm:$0xf0]  ;;  %v4231_v20 = vld [vmem:[%s7534_s2 + $0x748] sm:$0xf] }
  0xf9   :  { %2040 = vmatmul.bf16.vlgmr.msrb.gmra.mxu0 %v5725_v9  ;;  %2053 = vmatmul.bf16.vlgmr.msrb.gmra.mxu1 %v5727_v10 }
  0xfa   :  { %2084 = vmatpush.bf16.msra.mxu0 %v3928_v22  ;;  %2097 = vmatpush.bf16.msra.mxu1 %v4056_v23  ;;  %v3975_v22 = vld [vmem:[%s7534_s2 + $0x548] sm:$0xf]  ;;  %v4944_v23 = vld [vmem:[%s7534_s2 + $0x554] sm:$0xf0] }
  0xfb   :  { %2062 = vmatpush.bf16.msrb.mxu2 %v3608_v55  ;;  %2075 = vmatpush.bf16.msrb.mxu3 %v3736_v30  ;;  %v3976_v29 = vor.u32 %v4944_v23, %v3975_v22  ;;  %v3831_v55 = vld [vmem:[%s7534_s2 + $0x428] sm:$0xf]  ;;  %v4908_v30 = vld [vmem:[%s7534_s2 + $0x434] sm:$0xf0]  ;;  %v4794_v23 = vld [vmem:[%s7534_s2 + $0xac] sm:$0xf] }
  0xfc   :  { %v3832_v40 = vor.u32 %v4908_v30, %v3831_v55  ;;  %v5008_v22 = vld [vmem:[%s7534_s2 + $0x754] sm:$0xf0] }
  0xfe   :  { %2085 = vmatpush.bf16.msra.mxu0 %v3912_v33  ;;  %2098 = vmatpush.bf16.msra.mxu1 %v4040_v34  ;;  %v3959_v33 = vld [vmem:[%s7534_s2 + $0x528] sm:$0xf]  ;;  %v4940_v34 = vld [vmem:[%s7534_s2 + $0x534] sm:$0xf0] }
  0xff   :  { %2063 = vmatpush.bf16.msrb.mxu2 %v3592_v42  ;;  %2076 = vmatpush.bf16.msrb.mxu3 %v3720_v43  ;;  %v3960_v41 = vor.u32 %v4940_v34, %v3959_v33  ;;  %v3815_v42 = vld [vmem:[%s7534_s2 + $0x408] sm:$0xf]  ;;  %v4904_v43 = vld [vmem:[%s7534_s2 + $0x414] sm:$0xf0]  ;;  %v3388_v33 = vor.u32 %v4794_v23, %v3385_v25  ;;  %v3516_v34 = vor.u32 %v4826_v26, %v3513_v27  ;;  %v4778_v23 = vld [vmem:[%s7534_s2 + $0x2c] sm:$0xf] }
 0x100   :  { %v3816_v61 = vor.u32 %v4904_v43, %v3815_v42  ;;  %v3497_v42 = vld [vmem:[%s7534_s2 + $0x198] sm:$0xf0]  ;;  %v4810_v27 = vld [vmem:[%s7534_s2 + $0x12c] sm:$0xf] }
 0x102   :  { %2086 = vmatpush.bf16.msra.mxu0 %v3896_v46  ;;  %2099 = vmatpush.bf16.msra.mxu1 %v4024_v47  ;;  %v4280_v46 = vor.u32 %v5020_v39, %v4279_v38  ;;  %v4936_v47 = vld [vmem:[%s7534_s2 + $0x514] sm:$0xf0]  ;;  %v4790_v39 = vld [vmem:[%s7534_s2 + $0x8c] sm:$0xf] }
 0x103   :  { %2064 = vmatpush.bf16.msrb.mxu2 %v3576_v59  ;;  %2077 = vmatpush.bf16.msrb.mxu3 %v3704_v60  ;;  %v4834_v59 = vld [vmem:[%s7534_s2 + $0x1ec] sm:$0xf]  ;;  %v3545_v60 = vld [vmem:[%s7534_s2 + $0x1f8] sm:$0xf0]  ;;  %v3944_v62 = vor.u32 %v4936_v47, %v3943_v44  ;;  %v5004_v38 = vld [vmem:[%s7534_s2 + $0x734] sm:$0xf0] }
 0x104   :  { %v3548_v7 = vor.u32 %v4834_v59, %v3545_v60  ;;  %v4968_v47 = vld [vmem:[%s7534_s2 + $0x614] sm:$0xf0]  ;;  %v4818_v59 = vld [vmem:[%s7534_s2 + $0x16c] sm:$0xf]  ;;  %v3481_v60 = vld [vmem:[%s7534_s2 + $0x178] sm:$0xf0] }
 0x106   :  { %2087 = vmatpush.bf16.msra.mxu0 %v3880_v0  ;;  %2100 = vmatpush.bf16.msra.mxu1 %v4008_v3  ;;  %v4264_v0 = vor.u32 %v5016_v51, %v4263_v50  ;;  %v4119_v3 = vld [vmem:[%s7534_s2 + $0x668] sm:$0xf]  ;;  %v5000_v51 = vld [vmem:[%s7534_s2 + $0x714] sm:$0xf0] }
 0x107   :  { %2065 = vmatpush.bf16.msrb.mxu2 %v3560_v15  ;;  %2078 = vmatpush.bf16.msrb.mxu3 %v3688_v16  ;;  %v6511_v15 = vld [vmem:[%s7541_s9 + $0x8] sm:$0xf]  ;;  %v4120_v16 = vor.u32 %v4980_v4, %v4119_v3  ;;  %v4200_v4 = vor.u32 %v5000_v51, %v4199_v48  ;;  %v4930_v48 = vld [vmem:[%s7534_s2 + $0x4ec] sm:$0xf]  ;;  %v4057_v51 = vld [vmem:[%s7534_s2 + $0x5f8] sm:$0xf0] }
 0x108   :  { %v536_v24 = vperm.slane %v6511_v15, 0 }
 0x10a   :  { %2088 = vmatpush.bf16.msra.mxu0 %v3864_v17  ;;  %2101 = vmatpush.bf16.msra.mxu1 %v3992_v18  ;;  %v4248_v17 = vor.u32 %v5012_v8, %v4247_v5  ;;  %v4103_v18 = vld [vmem:[%s7534_s2 + $0x648] sm:$0xf]  ;;  %v3484_v8 = vor.u32 %v4818_v59, %v3481_v60 }
 0x10b   :  { %2110 = vmatpush.bf16.msra.mxu2 %v4184_v37  ;;  %2123 = vmatpush.bf16.msra.mxu3 %v4312_v21  ;;  %v3404_v37 = vor.u32 %v4798_v11, %v3401_v12  ;;  %v3532_v21 = vor.u32 %v4830_v13, %v3529_v14  ;;  %v4782_v11 = vld [vmem:[%s7534_s2 + $0x4c] sm:$0xf]  ;;  %v3337_v12 = vld [vmem:[%s7534_s2 + $0x58] sm:$0xf0] }
 0x10c   :  { %2066 = vmatmul.bf16.vlgmr.msrb.gmra.mxu2 %v5796_v57  ;;  %2079 = vmatmul.bf16.vlgmr.msrb.gmra.mxu3 %v5798_v58 }
 0x10e   :  { %2089 = vmatpush.bf16.msra.mxu0 %v3848_v28  ;;  %2102 = vmatpush.bf16.msra.mxu1 %v3976_v29  ;;  %v4104_v28 = vor.u32 %v4976_v19, %v4103_v18  ;;  %v4232_v29 = vor.u32 %v5008_v22, %v4231_v20  ;;  %v4862_v18 = vld [vmem:[%s7534_s2 + $0x2cc] sm:$0xf]  ;;  %v3657_v19 = vld [vmem:[%s7534_s2 + $0x2d8] sm:$0xf0] }
 0x10f   :  { %2111 = vmatpush.bf16.msra.mxu2 %v4168_v31  ;;  %2124 = vmatpush.bf16.msra.mxu3 %v4296_v32  ;;  %v4087_v31 = vld [vmem:[%s7534_s2 + $0x628] sm:$0xf]  ;;  %v4972_v32 = vld [vmem:[%s7534_s2 + $0x634] sm:$0xf0]  ;;  %v4894_v20 = vld [vmem:[%s7534_s2 + $0x3cc] sm:$0xf]  ;;  %v3660_v25 = vor.u32 %v4862_v18, %v3657_v19 }
 0x110   :  { %v4088_v44 = vor.u32 %v4972_v32, %v4087_v31  ;;  %v3769_v31 = vld [vmem:[%s7534_s2 + $0x3b8] sm:$0xf0]  ;;  %v4846_v18 = vld [vmem:[%s7534_s2 + $0x24c] sm:$0xf] }
 0x111   :  { %v3593_v19 = vld [vmem:[%s7534_s2 + $0x258] sm:$0xf0] }
 0x112   :  { %2090 = vmatpush.bf16.msra.mxu0 %v3832_v40  ;;  %2103 = vmatpush.bf16.msra.mxu1 %v3960_v41  ;;  %v3369_v40 = vld [vmem:[%s7534_s2 + $0x98] sm:$0xf0]  ;;  %v4822_v41 = vld [vmem:[%s7534_s2 + $0x18c] sm:$0xf] }
 0x113   :  { %2112 = vmatpush.bf16.msra.mxu2 %v4152_v45  ;;  %2125 = vmatpush.bf16.msra.mxu3 %v4280_v46  ;;  %v4216_v45 = vor.u32 %v5004_v38, %v4215_v36  ;;  %v4071_v46 = vld [vmem:[%s7534_s2 + $0x608] sm:$0xf]  ;;  %v3372_v49 = vor.u32 %v4790_v39, %v3369_v40  ;;  %v3500_v50 = vor.u32 %v4822_v41, %v3497_v42  ;;  %v4774_v36 = vld [vmem:[%s7534_s2 + $0xc] sm:$0xf]  ;;  %v3305_v38 = vld [vmem:[%s7534_s2 + $0x18] sm:$0xf0] }
 0x114   :  { %v4072_v3 = vor.u32 %v4968_v47, %v4071_v46  ;;  %v4806_v39 = vld [vmem:[%s7534_s2 + $0x10c] sm:$0xf]  ;;  %v3433_v42 = vld [vmem:[%s7534_s2 + $0x118] sm:$0xf0] }
 0x115   :  { %v1833_v55 = vpop.f32.mrf.mxu0  ;;  %v1846_v30 = vpop.f32.mrf.mxu1  ;;  %v4886_v46 = vld [vmem:[%s7534_s2 + $0x38c] sm:$0xf]  ;;  %v3753_v47 = vld [vmem:[%s7534_s2 + $0x398] sm:$0xf0] }
 0x116   :  { %2091 = vmatpush.bf16.msra.mxu0 %v3816_v61  ;;  %2104 = vmatpush.bf16.msra.mxu1 %v3944_v62  ;;  %v1834_v35 = vadd.f32 %v1833_v55, %v536_v24  ;;  %v4866_v61 = vld [vmem:[%s7534_s2 + $0x2ec] sm:$0xf]  ;;  %v3673_v62 = vld [vmem:[%s7534_s2 + $0x2f8] sm:$0xf0]  ;;  %v3756_v60 = vor.u32 %v4886_v46, %v3753_v47 }
 0x117   :  { %2113 = vmatpush.bf16.msra.mxu2 %v4136_v63  ;;  %2126 = vmatpush.bf16.msra.mxu3 %v4264_v0  ;;  %v4898_v63 = vld [vmem:[%s7534_s2 + $0x3ec] sm:$0xf]  ;;  %v3801_v0 = vld [vmem:[%s7534_s2 + $0x3f8] sm:$0xf0]  ;;  %v3676_v13 = vor.u32 %v4866_v61, %v3673_v62 }
 0x118   :  { %v6564_v43 = vadd.f32 %v1846_v30, %v1834_v35  ;;  %v3804_v14 = vor.u32 %v4898_v63, %v3801_v0  ;;  %v3321_v24 = vld [vmem:[%s7534_s2 + $0x38] sm:$0xf0]  ;;  %v4890_v30 = vld [vmem:[%s7534_s2 + $0x3ac] sm:$0xf] }
 0x119   :  { %2092 = vmatmul.bf16.vlgmr.msra.gmra.mxu0 %v5792_v54  ;;  %2105 = vmatmul.bf16.vlgmr.msra.gmra.mxu1 %v5794_v56  ;;  %v3641_v55 = vld [vmem:[%s7534_s2 + $0x2b8] sm:$0xf0]  ;;  %v3324_v32 = vor.u32 %v4778_v23, %v3321_v24  ;;  %v3772_v41 = vor.u32 %v4890_v30, %v3769_v31  ;;  %v4850_v63 = vld [vmem:[%s7534_s2 + $0x26c] sm:$0xf] }
 0x11a   :  { %2136 = vmatpush.bf16.msrb.mxu0 %v3420_v6  ;;  %2149 = vmatpush.bf16.msrb.mxu1 %v3548_v7  ;;  %v3356_v7 = vor.u32 %v4786_v52, %v3353_v53  ;;  %v3308_v52 = vor.u32 %v4774_v36, %v3305_v38  ;;  %v3436_v53 = vor.u32 %v4806_v39, %v3433_v42  ;;  %v3609_v0 = vld [vmem:[%s7534_s2 + $0x278] sm:$0xf0]  ;;  %v4922_v23 = vld [vmem:[%s7534_s2 + $0x4ac] sm:$0xf] }
 0x11b   :  { %2114 = vmatpush.bf16.msra.mxu2 %v4120_v16  ;;  %2127 = vmatpush.bf16.msra.mxu3 %v4248_v17  ;;  %v4814_v16 = vld [vmem:[%s7534_s2 + $0x14c] sm:$0xf]  ;;  %v3465_v17 = vld [vmem:[%s7534_s2 + $0x158] sm:$0xf0] }
 0x11c   :  { %v3468_v22 = vor.u32 %v4814_v16, %v3465_v17  ;;  %v3612_v16 = vor.u32 %v4850_v63, %v3609_v0  ;;  %v3897_v24 = vld [vmem:[%s7534_s2 + $0x4b8] sm:$0xf0]  ;;  %v4918_v36 = vld [vmem:[%s7534_s2 + $0x48c] sm:$0xf] }
 0x11d   :  { %v1835_v5 = vpop.f32.mrf.mxu0  ;;  %v1848_v6 = vpop.f32.mrf.mxu1  ;;  %v3900_v30 = vor.u32 %v4922_v23, %v3897_v24  ;;  %v3881_v38 = vld [vmem:[%s7534_s2 + $0x498] sm:$0xf0]  ;;  %v4950_v39 = vld [vmem:[%s7534_s2 + $0x58c] sm:$0xf] }
 0x11e   :  { %2137 = vmatpush.bf16.msrb.mxu0 %v3404_v37  ;;  %2150 = vmatpush.bf16.msrb.mxu1 %v3532_v21  ;;  %v3785_v37 = vld [vmem:[%s7534_s2 + $0x3d8] sm:$0xf0]  ;;  %v3340_v21 = vor.u32 %v4782_v11, %v3337_v12  ;;  %v4882_v5 = vld [vmem:[%s7534_s2 + $0x36c] sm:$0xf] }
 0x11f   :  { %2115 = vmatpush.bf16.msra.mxu2 %v4104_v28  ;;  %2128 = vmatpush.bf16.msra.mxu3 %v4232_v29  ;;  %v3788_v26 = vor.u32 %v4894_v20, %v3785_v37  ;;  %v3449_v28 = vld [vmem:[%s7534_s2 + $0x138] sm:$0xf0]  ;;  %v4858_v29 = vld [vmem:[%s7534_s2 + $0x2ac] sm:$0xf] }
 0x120   :  { %v3644_v40 = vor.u32 %v4858_v29, %v3641_v55  ;;  %v3737_v6 = vld [vmem:[%s7534_s2 + $0x378] sm:$0xf0]  ;;  %v4958_v11 = vld [vmem:[%s7534_s2 + $0x5cc] sm:$0xf] }
 0x121   :  { %v4041_v12 = vld [vmem:[%s7534_s2 + $0x5d8] sm:$0xf0]  ;;  %v3740_v17 = vor.u32 %v4882_v5, %v3737_v6  ;;  %v4838_v46 = vld [vmem:[%s7534_s2 + $0x20c] sm:$0xf] }
 0x122   :  { %2138 = vmatpush.bf16.msrb.mxu0 %v3388_v33  ;;  %2151 = vmatpush.bf16.msrb.mxu1 %v3516_v34  ;;  %v3452_v33 = vor.u32 %v4810_v27, %v3449_v28  ;;  %v4044_v37 = vor.u32 %v4958_v11, %v4041_v12  ;;  %v3596_v27 = vor.u32 %v4846_v18, %v3593_v19  ;;  %v3577_v55 = vld [vmem:[%s7534_s2 + $0x238] sm:$0xf0]  ;;  %v4994_v63 = vld [vmem:[%s7534_s2 + $0x6ec] sm:$0xf] }
 0x123   :  { %2116 = vmatpush.bf16.msra.mxu2 %v4088_v44  ;;  %2129 = vmatpush.bf16.msra.mxu3 %v4216_v45  ;;  %v4854_v44 = vld [vmem:[%s7534_s2 + $0x28c] sm:$0xf]  ;;  %v3625_v45 = vld [vmem:[%s7534_s2 + $0x298] sm:$0xf0] }
 0x124   :  { %v3628_v59 = vor.u32 %v4854_v44, %v3625_v45  ;;  %v3561_v47 = vld [vmem:[%s7534_s2 + $0x218] sm:$0xf0]  ;;  %v4942_v18 = vld [vmem:[%s7534_s2 + $0x54c] sm:$0xf] }
 0x125   :  { %v4185_v0 = vld [vmem:[%s7534_s2 + $0x6f8] sm:$0xf0]  ;;  %v3564_v5 = vor.u32 %v4838_v46, %v3561_v47 }
 0x126   :  { %2139 = vmatpush.bf16.msrb.mxu0 %v3372_v49  ;;  %2152 = vmatpush.bf16.msrb.mxu1 %v3500_v50  ;;  %v6652_v34 = vpop.f32.mrf.mxu0  ;;  %v6654_v35 = vpop.f32.mrf.mxu1  ;;  %v3929_v49 = vld [vmem:[%s7534_s2 + $0x4f8] sm:$0xf0]  ;;  %v4962_v50 = vld [vmem:[%s7534_s2 + $0x5ec] sm:$0xf] }
 0x127   :  { %2117 = vmatpush.bf16.msra.mxu2 %v4072_v3  ;;  %2130 = vmatpush.bf16.msra.mxu3 %v4200_v4  ;;  %v3932_v3 = vor.u32 %v4930_v48, %v3929_v49  ;;  %v4060_v4 = vor.u32 %v4962_v50, %v4057_v51  ;;  %v4870_v48 = vld [vmem:[%s7534_s2 + $0x30c] sm:$0xf]  ;;  %v3884_v49 = vor.u32 %v4918_v36, %v3881_v38  ;;  %v3689_v51 = vld [vmem:[%s7534_s2 + $0x318] sm:$0xf0] }
 0x128   :  { %v3692_v6 = vor.u32 %v4870_v48, %v3689_v51  ;;  %v3977_v19 = vld [vmem:[%s7534_s2 + $0x558] sm:$0xf0]  ;;  %v4982_v48 = vld [vmem:[%s7534_s2 + $0x68c] sm:$0xf] }
 0x129   :  { %v3945_v47 = vld [vmem:[%s7534_s2 + $0x518] sm:$0xf0] }
 0x12a   :  { %2140 = vmatpush.bf16.msrb.mxu0 %v3356_v7  ;;  %2153 = vmatpush.bf16.msrb.mxu1 %v3484_v8  ;;  %v4926_v7 = vld [vmem:[%s7534_s2 + $0x4cc] sm:$0xf]  ;;  %v3913_v8 = vld [vmem:[%s7534_s2 + $0x4d8] sm:$0xf0] }
 0x12b   :  { %2162 = vmatpush.bf16.msrb.mxu2 %v3676_v13  ;;  %2175 = vmatpush.bf16.msrb.mxu3 %v3804_v14  ;;  %v6692_v61 = vpop.f32.mrf.mxu2  ;;  %v6694_v62 = vpop.f32.mrf.mxu3  ;;  %v3916_v20 = vor.u32 %v4926_v7, %v3913_v8  ;;  %v4265_v51 = vld [vmem:[%s7534_s2 + $0x798] sm:$0xf0] }
 0x12c   :  { %2118 = vmatmul.bf16.vlgmr.msra.gmra.mxu2 %v5914_v1  ;;  %2131 = vmatmul.bf16.vlgmr.msra.gmra.mxu3 %v5916_v2 }
 0x12e   :  { %2141 = vmatpush.bf16.msrb.mxu0 %v3340_v21  ;;  %2154 = vmatpush.bf16.msrb.mxu1 %v3468_v22  ;;  %v1887_v13 = vpop.f32.mrf.mxu0  ;;  %v1900_v14 = vpop.f32.mrf.mxu1  ;;  %v4878_v21 = vld [vmem:[%s7534_s2 + $0x34c] sm:$0xf]  ;;  %v3721_v22 = vld [vmem:[%s7534_s2 + $0x358] sm:$0xf0] }
 0x12f   :  { %2163 = vmatpush.bf16.msrb.mxu2 %v3660_v25  ;;  %2176 = vmatpush.bf16.msrb.mxu3 %v3788_v26  ;;  %v4954_v25 = vld [vmem:[%s7534_s2 + $0x5ac] sm:$0xf]  ;;  %v4025_v26 = vld [vmem:[%s7534_s2 + $0x5b8] sm:$0xf0]  ;;  %v3724_v28 = vor.u32 %v4878_v21, %v3721_v22 }
 0x130   :  { %v4028_v31 = vor.u32 %v4954_v25, %v4025_v26  ;;  %v4910_v13 = vld [vmem:[%s7534_s2 + $0x44c] sm:$0xf]  ;;  %v3849_v14 = vld [vmem:[%s7534_s2 + $0x458] sm:$0xf0]  ;;  %v3980_v26 = vor.u32 %v4942_v18, %v3977_v19  ;;  %v4431_v18 = vld [vmem:[%s7535_s3 + $0xe0] sm:$0xf] }
 0x131   :  { %v5022_v21 = vld [vmem:[%s7534_s2 + $0x7cc] sm:$0xf]  ;;  %v4297_v22 = vld [vmem:[%s7534_s2 + $0x7d8] sm:$0xf0]  ;;  %v3852_v25 = vor.u32 %v4910_v13, %v3849_v14  ;;  %v5058_v19 = vld [vmem:[%s7535_s3 + $0xe4] sm:$0xf0] }
 0x132   :  { %2142 = vmatpush.bf16.msrb.mxu0 %v3324_v32  ;;  %2155 = vmatpush.bf16.msrb.mxu1 %v3452_v33  ;;  %v4874_v32 = vld [vmem:[%s7534_s2 + $0x32c] sm:$0xf]  ;;  %v3705_v33 = vld [vmem:[%s7534_s2 + $0x338] sm:$0xf0] }
 0x133   :  { %2164 = vmatpush.bf16.msrb.mxu2 %v3644_v40  ;;  %2177 = vmatpush.bf16.msrb.mxu3 %v3772_v41  ;;  %v1861_v29 = vpop.f32.mrf.mxu2  ;;  %v4009_v40 = vld [vmem:[%s7534_s2 + $0x598] sm:$0xf0]  ;;  %v3708_v42 = vor.u32 %v4874_v32, %v3705_v33  ;;  %v5018_v32 = vld [vmem:[%s7534_s2 + $0x7ac] sm:$0xf] }
 0x134   :  { %v4012_v50 = vor.u32 %v4950_v39, %v4009_v40  ;;  %v4281_v33 = vld [vmem:[%s7534_s2 + $0x7b8] sm:$0xf0]  ;;  %v5010_v13 = vld [vmem:[%s7534_s2 + $0x76c] sm:$0xf] }
 0x135   :  { %v3817_v40 = vld [vmem:[%s7534_s2 + $0x418] sm:$0xf0]  ;;  %v4284_v46 = vor.u32 %v5018_v32, %v4281_v33 }
 0x136   :  { %2143 = vmatpush.bf16.msrb.mxu0 %v3308_v52  ;;  %2156 = vmatpush.bf16.msrb.mxu1 %v3436_v53  ;;  %v6770_v44 = vpop.f32.mrf.mxu0  ;;  %v6772_v45 = vpop.f32.mrf.mxu1  ;;  %v4914_v52 = vld [vmem:[%s7534_s2 + $0x46c] sm:$0xf]  ;;  %v3865_v53 = vld [vmem:[%s7534_s2 + $0x478] sm:$0xf0] }
 0x137   :  { %2165 = vmatpush.bf16.msrb.mxu2 %v3628_v59  ;;  %2178 = vmatpush.bf16.msrb.mxu3 %v3756_v60  ;;  %v4946_v59 = vld [vmem:[%s7534_s2 + $0x56c] sm:$0xf]  ;;  %v3993_v60 = vld [vmem:[%s7534_s2 + $0x578] sm:$0xf0]  ;;  %v3868_v7 = vor.u32 %v4914_v52, %v3865_v53  ;;  %v4375_v52 = vld [vmem:[%s7535_s3 + $0x70] sm:$0xf] }
 0x138   :  { %v3996_v8 = vor.u32 %v4946_v59, %v3993_v60  ;;  %v5044_v53 = vld [vmem:[%s7535_s3 + $0x74] sm:$0xf0]  ;;  %v4439_v59 = vld [vmem:[%s7535_s3 + $0xf0] sm:$0xf]  ;;  %v4249_v14 = vld [vmem:[%s7534_s2 + $0x778] sm:$0xf0] }
 0x139   :  { %2144 = vmatmul.bf16.vlgmr.msrb.gmra.mxu0 %v5725_v9  ;;  %2157 = vmatmul.bf16.vlgmr.msrb.gmra.mxu1 %v5727_v10  ;;  %v1874_v9 = vpop.f32.mrf.mxu3  ;;  %v4842_v10 = vld [vmem:[%s7534_s2 + $0x22c] sm:$0xf]  ;;  %v5060_v60 = vld [vmem:[%s7535_s3 + $0xf4] sm:$0xf0]  ;;  %v4089_v32 = vld [vmem:[%s7534_s2 + $0x638] sm:$0xf0] }
 0x13a   :  { %2188 = vmatpush.bf16.msra.mxu0 %v3932_v3  ;;  %2201 = vmatpush.bf16.msra.mxu1 %v4060_v4  ;;  %v3580_v41 = vor.u32 %v4842_v10, %v3577_v55  ;;  %v5026_v3 = vld [vmem:[%s7534_s2 + $0x7ec] sm:$0xf]  ;;  %v4313_v4 = vld [vmem:[%s7534_s2 + $0x7f8] sm:$0xf0]  ;;  %v4300_v9 = vor.u32 %v5022_v21, %v4297_v22 }
 0x13b   :  { %2166 = vmatpush.bf16.msrb.mxu2 %v3612_v16  ;;  %2179 = vmatpush.bf16.msrb.mxu3 %v3740_v17  ;;  %v6810_v11 = vpop.f32.mrf.mxu2  ;;  %v4188_v16 = vor.u32 %v4994_v63, %v4185_v0  ;;  %v4316_v17 = vor.u32 %v5026_v3, %v4313_v4  ;;  %v4938_v10 = vld [vmem:[%s7534_s2 + $0x52c] sm:$0xf]  ;;  %v3961_v55 = vld [vmem:[%s7534_s2 + $0x538] sm:$0xf0] }
 0x13c   :  { %v3964_v38 = vor.u32 %v4938_v10, %v3961_v55  ;;  %v4423_v10 = vld [vmem:[%s7535_s3 + $0xd0] sm:$0xf]  ;;  %v5056_v55 = vld [vmem:[%s7535_s3 + $0xd4] sm:$0xf0] }
 0x13e   :  { %2189 = vmatpush.bf16.msra.mxu0 %v3916_v20  ;;  %2202 = vmatpush.bf16.msra.mxu1 %v4044_v37  ;;  %v4990_v20 = vld [vmem:[%s7534_s2 + $0x6cc] sm:$0xf]  ;;  %v4169_v37 = vld [vmem:[%s7534_s2 + $0x6d8] sm:$0xf0]  ;;  %v1939_v23 = vpop.f32.mrf.mxu0  ;;  %v1952_v24 = vpop.f32.mrf.mxu1 }
 0x13f   :  { %2167 = vmatpush.bf16.msrb.mxu2 %v3596_v27  ;;  %2180 = vmatpush.bf16.msrb.mxu3 %v3724_v28  ;;  %v4906_v27 = vld [vmem:[%s7534_s2 + $0x42c] sm:$0xf]  ;;  %v3833_v28 = vld [vmem:[%s7534_s2 + $0x438] sm:$0xf0]  ;;  %v4172_v29 = vor.u32 %v4990_v20, %v4169_v37  ;;  %v4252_v37 = vor.u32 %v5010_v13, %v4249_v14  ;;  %v4335_v14 = vld [vmem:[%s7535_s3 + $0x20] sm:$0xf] }
 0x140   :  { %v3836_v36 = vor.u32 %v4906_v27, %v3833_v28  ;;  %v4974_v23 = vld [vmem:[%s7534_s2 + $0x64c] sm:$0xf]  ;;  %v4105_v24 = vld [vmem:[%s7534_s2 + $0x658] sm:$0xf0] }
 0x141   :  { %v6812_v12 = vpop.f32.mrf.mxu3  ;;  %v5006_v27 = vld [vmem:[%s7534_s2 + $0x74c] sm:$0xf]  ;;  %v4233_v28 = vld [vmem:[%s7534_s2 + $0x758] sm:$0xf0] }
 0x142   :  { %2190 = vmatpush.bf16.msra.mxu0 %v3900_v30  ;;  %2203 = vmatpush.bf16.msra.mxu1 %v4028_v31  ;;  %v4986_v30 = vld [vmem:[%s7534_s2 + $0x6ac] sm:$0xf]  ;;  %v4153_v31 = vld [vmem:[%s7534_s2 + $0x6b8] sm:$0xf0] }
 0x143   :  { %2168 = vmatpush.bf16.msrb.mxu2 %v3580_v41  ;;  %2181 = vmatpush.bf16.msrb.mxu3 %v3708_v42  ;;  %v1913_v39 = vpop.f32.mrf.mxu2  ;;  %v4934_v41 = vld [vmem:[%s7534_s2 + $0x50c] sm:$0xf]  ;;  %v4156_v42 = vor.u32 %v4986_v30, %v4153_v31  ;;  %v1860_v30 = vadd.f32 %v6692_v61, %v6564_v43  ;;  %v4236_v31 = vor.u32 %v5006_v27, %v4233_v28  ;;  %v4217_v61 = vld [vmem:[%s7534_s2 + $0x738] sm:$0xf0]  ;;  %v4319_v27 = vld [vmem:[%s7535_s3] sm:$0xf] }
 0x144   :  { %v3948_v0 = vor.u32 %v4934_v41, %v3945_v47  ;;  %v5002_v43 = vld [vmem:[%s7534_s2 + $0x72c] sm:$0xf]  ;;  %v5038_v39 = vld [vmem:[%s7535_s3 + $0x44] sm:$0xf0] }
 0x146   :  { %2191 = vmatpush.bf16.msra.mxu0 %v3884_v49  ;;  %2204 = vmatpush.bf16.msra.mxu1 %v4012_v50  ;;  %v4137_v49 = vld [vmem:[%s7534_s2 + $0x698] sm:$0xf0]  ;;  %v5014_v50 = vld [vmem:[%s7534_s2 + $0x78c] sm:$0xf] }
 0x147   :  { %2169 = vmatpush.bf16.msrb.mxu2 %v3564_v5  ;;  %2182 = vmatpush.bf16.msrb.mxu3 %v3692_v6  ;;  %v4140_v3 = vor.u32 %v4982_v48, %v4137_v49  ;;  %v4268_v4 = vor.u32 %v5014_v50, %v4265_v51  ;;  %v4978_v5 = vld [vmem:[%s7534_s2 + $0x66c] sm:$0xf]  ;;  %v4121_v6 = vld [vmem:[%s7534_s2 + $0x678] sm:$0xf0]  ;;  %v4220_v48 = vor.u32 %v5002_v43, %v4217_v61 }
 0x148   :  { %v4124_v20 = vor.u32 %v4978_v5, %v4121_v6  ;;  %v4966_v51 = vld [vmem:[%s7534_s2 + $0x60c] sm:$0xf] }
 0x14a   :  { %2192 = vmatpush.bf16.msra.mxu0 %v3868_v7  ;;  %2205 = vmatpush.bf16.msra.mxu1 %v3996_v8  ;;  %v4376_v7 = vor.u32 %v5044_v53, %v4375_v52  ;;  %v4440_v8 = vor.u32 %v5060_v60, %v4439_v59  ;;  %v4201_v59 = vld [vmem:[%s7534_s2 + $0x718] sm:$0xf0]  ;;  %v4343_v60 = vld [vmem:[%s7535_s3 + $0x30] sm:$0xf] }
 0x14b   :  { %2214 = vmatpush.bf16.msra.mxu2 %v4188_v16  ;;  %2227 = vmatpush.bf16.msra.mxu3 %v4316_v17  ;;  %v4367_v16 = vld [vmem:[%s7535_s3 + $0x60] sm:$0xf]  ;;  %v5042_v17 = vld [vmem:[%s7535_s3 + $0x64] sm:$0xf0] }
 0x14c   :  { %2170 = vmatmul.bf16.vlgmr.msrb.gmra.mxu2 %v5796_v57  ;;  %2183 = vmatmul.bf16.vlgmr.msrb.gmra.mxu3 %v5798_v58  ;;  %v1926_v57 = vpop.f32.mrf.mxu3  ;;  %v4902_v58 = vld [vmem:[%s7534_s2 + $0x40c] sm:$0xf] }
 0x14d   :  { %v3820_v63 = vor.u32 %v4902_v58, %v3817_v40  ;;  %v4415_v57 = vld [vmem:[%s7535_s3 + $0xc0] sm:$0xf]  ;;  %v5054_v58 = vld [vmem:[%s7535_s3 + $0xc4] sm:$0xf0]  ;;  %v1873_v40 = vadd.f32 %v6694_v62, %v1860_v30  ;;  %v4073_v62 = vld [vmem:[%s7534_s2 + $0x618] sm:$0xf0] }
 0x14e   :  { %2193 = vmatpush.bf16.msra.mxu0 %v3852_v25  ;;  %2206 = vmatpush.bf16.msra.mxu1 %v3980_v26  ;;  %v4368_v25 = vor.u32 %v5042_v17, %v4367_v16  ;;  %v4432_v26 = vor.u32 %v5058_v19, %v4431_v18  ;;  %v4416_v53 = vor.u32 %v5054_v58, %v4415_v57  ;;  %v5034_v16 = vld [vmem:[%s7535_s3 + $0x24] sm:$0xf0]  ;;  %v4495_v57 = vld [vmem:[%s7535_s3 + $0x160] sm:$0xf] }
 0x14f   :  { %2215 = vmatpush.bf16.msra.mxu2 %v4172_v29  ;;  %2228 = vmatpush.bf16.msra.mxu3 %v4300_v9  ;;  %v6924_v21 = vpop.f32.mrf.mxu2  ;;  %v4359_v29 = vld [vmem:[%s7535_s3 + $0x50] sm:$0xf]  ;;  %v5040_v9 = vld [vmem:[%s7535_s3 + $0x54] sm:$0xf0]  ;;  %v4076_v6 = vor.u32 %v4966_v51, %v4073_v62  ;;  %v5074_v58 = vld [vmem:[%s7535_s3 + $0x164] sm:$0xf0] }
 0x150   :  { %v4360_v33 = vor.u32 %v5040_v9, %v4359_v29 }
 0x152   :  { %2194 = vmatpush.bf16.msra.mxu0 %v3836_v36  ;;  %2207 = vmatpush.bf16.msra.mxu1 %v3964_v38  ;;  %v4424_v36 = vor.u32 %v5056_v55, %v4423_v10  ;;  %v4351_v38 = vld [vmem:[%s7535_s3 + $0x40] sm:$0xf]  ;;  %v5030_v10 = vld [vmem:[%s7535_s3 + $0x4] sm:$0xf0]  ;;  %v5076_v55 = vld [vmem:[%s7535_s3 + $0x174] sm:$0xf0] }
 0x153   :  { %2216 = vmatpush.bf16.msra.mxu2 %v4156_v42  ;;  %2229 = vmatpush.bf16.msra.mxu3 %v4284_v46  ;;  %v537_v46 = vperm.slane %v6511_v15, 1  ;;  %v4352_v52 = vor.u32 %v5038_v39, %v4351_v38  ;;  %v4998_v15 = vld [vmem:[%s7534_s2 + $0x70c] sm:$0xf]  ;;  %v4320_v43 = vor.u32 %v5030_v10, %v4319_v27  ;;  %v5041_v39 = vld [vmem:[%s7535_s3 + $0x64] sm:$0xf] }
 0x154   :  { %v6926_v22 = vpop.f32.mrf.mxu3  ;;  %v5051_v27 = vld [vmem:[%s7535_s3 + $0xb4] sm:$0xf]  ;;  %v5066_v10 = vld [vmem:[%s7535_s3 + $0x124] sm:$0xf0] }
 0x155   :  { %v1938_v5 = vadd.f32 %v6770_v44, %v537_v46  ;;  %v5050_v44 = vld [vmem:[%s7535_s3 + $0xa4] sm:$0xf0]  ;;  %v4433_v46 = vld [vmem:[%s7535_s3 + $0xe8] sm:$0xf0] }
 0x156   :  { %2195 = vmatpush.bf16.msra.mxu0 %v3820_v63  ;;  %2208 = vmatpush.bf16.msra.mxu1 %v3948_v0  ;;  %v6981_v41 = vpop.f32.mrf.mxu0  ;;  %v6983_v42 = vpop.f32.mrf.mxu1  ;;  %v5036_v63 = vld [vmem:[%s7535_s3 + $0x34] sm:$0xf0]  ;;  %v4407_v0 = vld [vmem:[%s7535_s3 + $0xb0] sm:$0xf] }
 0x157   :  { %2217 = vmatpush.bf16.msra.mxu2 %v4140_v3  ;;  %2230 = vmatpush.bf16.msra.mxu3 %v4268_v4  ;;  %v1965_v49 = vpop.f32.mrf.mxu2  ;;  %v5052_v3 = vld [vmem:[%s7535_s3 + $0xb4] sm:$0xf0]  ;;  %v1886_v4 = vadd.f32 %v6652_v34, %v1873_v40  ;;  %v4399_v34 = vld [vmem:[%s7535_s3 + $0xa0] sm:$0xf]  ;;  %v4369_v40 = vld [vmem:[%s7535_s3 + $0x68] sm:$0xf0] }
 0x158   :  { %v4408_v13 = vor.u32 %v5052_v3, %v4407_v0  ;;  %v4372_v62 = vor.u32 %v5041_v39, %v4369_v40  ;;  %v4425_v0 = vld [vmem:[%s7535_s3 + $0xd8] sm:$0xf0]  ;;  %v5062_v40 = vld [vmem:[%s7535_s3 + $0x104] sm:$0xf0] }
 0x159   :  { %2196 = vmatmul.bf16.vlgmr.msra.gmra.mxu0 %v5792_v54  ;;  %2209 = vmatmul.bf16.vlgmr.msra.gmra.mxu1 %v5794_v56  ;;  %v4108_v54 = vor.u32 %v4974_v23, %v4105_v24  ;;  %v4970_v56 = vld [vmem:[%s7534_s2 + $0x62c] sm:$0xf]  ;;  %v1899_v17 = vadd.f32 %v6654_v35, %v1886_v4  ;;  %v4336_v23 = vor.u32 %v5034_v16, %v4335_v14  ;;  %v5032_v35 = vld [vmem:[%s7535_s3 + $0x14] sm:$0xf0]  ;;  %v4479_v4 = vld [vmem:[%s7535_s3 + $0x140] sm:$0xf] }
 0x15a   :  { %2638 = vmatpush.bf16.msrb.mxu0 %v4376_v7  ;;  %2651 = vmatpush.bf16.msrb.mxu1 %v4440_v8  ;;  %v4092_v47 = vor.u32 %v4970_v56, %v4089_v32  ;;  %v4204_v7 = vor.u32 %v4998_v15, %v4201_v59  ;;  %v4344_v8 = vor.u32 %v5036_v63, %v4343_v60  ;;  %v4441_v56 = vld [vmem:[%s7535_s3 + $0xf8] sm:$0xf0]  ;;  %v4487_v15 = vld [vmem:[%s7535_s3 + $0x150] sm:$0xf]  ;;  %v5055_v63 = vld [vmem:[%s7535_s3 + $0xd4] sm:$0xf] }
 0x15b   :  { %2218 = vmatpush.bf16.msra.mxu2 %v4124_v20  ;;  %2231 = vmatpush.bf16.msra.mxu3 %v4252_v37  ;;  %v1951_v20 = vadd.f32 %v6772_v45, %v1938_v5  ;;  %v1912_v37 = vadd.f32 %v6810_v11, %v1899_v17  ;;  %v4400_v24 = vor.u32 %v5050_v44, %v4399_v34  ;;  %v4391_v45 = vld [vmem:[%s7535_s3 + $0x90] sm:$0xf]  ;;  %v5048_v11 = vld [vmem:[%s7535_s3 + $0x94] sm:$0xf0]  ;;  %v4361_v60 = vld [vmem:[%s7535_s3 + $0x58] sm:$0xf0] }
 0x15c   :  { %v1978_v50 = vpop.f32.mrf.mxu3  ;;  %v4392_v9 = vor.u32 %v5048_v11, %v4391_v45  ;;  %v5070_v5 = vld [vmem:[%s7535_s3 + $0x144] sm:$0xf0]  ;;  %v4353_v14 = vld [vmem:[%s7535_s3 + $0x48] sm:$0xf0]  ;;  %v5053_v34 = vld [vmem:[%s7535_s3 + $0xc4] sm:$0xf] }
 0x15d   :  { %v1925_v28 = vadd.f32 %v6812_v12, %v1912_v37  ;;  %v5043_v12 = vld [vmem:[%s7535_s3 + $0x74] sm:$0xf]  ;;  %v4417_v44 = vld [vmem:[%s7535_s3 + $0xc8] sm:$0xf0]  ;;  %v4480_v17 = vor.u32 %v5070_v5, %v4479_v4  ;;  %v4471_v45 = vld [vmem:[%s7535_s3 + $0x130] sm:$0xf] }
 0x15e   :  { %2639 = vmatpush.bf16.msrb.mxu0 %v4368_v25  ;;  %2652 = vmatpush.bf16.msrb.mxu1 %v4432_v26  ;;  %v1991_v18 = vpop.f32.mrf.mxu0  ;;  %v2004_v19 = vpop.f32.mrf.mxu1  ;;  %v4327_v25 = vld [vmem:[%s7535_s3 + $0x10] sm:$0xf]  ;;  %v1964_v26 = vadd.f32 %v6924_v21, %v1951_v20  ;;  %v5068_v11 = vld [vmem:[%s7535_s3 + $0x134] sm:$0xf0]  ;;  %v4393_v39 = vld [vmem:[%s7535_s3 + $0x98] sm:$0xf0] }
 0x15f   :  { %2219 = vmatpush.bf16.msra.mxu2 %v4108_v54  ;;  %2232 = vmatpush.bf16.msra.mxu3 %v4236_v31  ;;  %v4328_v29 = vor.u32 %v5032_v35, %v4327_v25  ;;  %v4503_v21 = vld [vmem:[%s7535_s3 + $0x170] sm:$0xf]  ;;  %v4377_v54 = vld [vmem:[%s7535_s3 + $0x78] sm:$0xf0]  ;;  %v5059_v31 = vld [vmem:[%s7535_s3 + $0xf4] sm:$0xf]  ;;  %v4420_v25 = vor.u32 %v5053_v34, %v4417_v44 }
 0x160   :  { %v1977_v30 = vadd.f32 %v6926_v22, %v1964_v26  ;;  %v4504_v32 = vor.u32 %v5076_v55, %v4503_v21  ;;  %v4380_v61 = vor.u32 %v5043_v12, %v4377_v54  ;;  %v4444_v38 = vor.u32 %v5059_v31, %v4441_v56  ;;  %v5035_v35 = vld [vmem:[%s7535_s3 + $0x34] sm:$0xf]  ;;  %v4345_v26 = vld [vmem:[%s7535_s3 + $0x38] sm:$0xf0]  ;;  %v5033_v12 = vld [vmem:[%s7535_s3 + $0x24] sm:$0xf] }
 0x161   :  { %v4337_v21 = vld [vmem:[%s7535_s3 + $0x28] sm:$0xf0]  ;;  %v5049_v55 = vld [vmem:[%s7535_s3 + $0xa4] sm:$0xf]  ;;  %v4455_v31 = vld [vmem:[%s7535_s3 + $0x110] sm:$0xf] }
 0x162   :  { %2640 = vmatpush.bf16.msrb.mxu0 %v4360_v33  ;;  %2653 = vmatpush.bf16.msrb.mxu1 %v4424_v36  ;;  %v2240_v33 = vmax.f32 %v1925_v28, 0.0  ;;  %v1990_v36 = vadd.f32 %v6981_v41, %v1977_v30  ;;  %v5057_v41 = vld [vmem:[%s7535_s3 + $0xe4] sm:$0xf]  ;;  %v4409_v28 = vld [vmem:[%s7535_s3 + $0xb8] sm:$0xf0] }
 0x163   :  { %2220 = vmatpush.bf16.msra.mxu2 %v4092_v47  ;;  %2233 = vmatpush.bf16.msra.mxu3 %v4220_v48  ;;  %v4496_v47 = vor.u32 %v5074_v58, %v4495_v57  ;;  %v4401_v30 = vld [vmem:[%s7535_s3 + $0xa8] sm:$0xf0]  ;;  %v5064_v56 = vld [vmem:[%s7535_s3 + $0x114] sm:$0xf0]  ;;  %v4447_v58 = vld [vmem:[%s7535_s3 + $0x100] sm:$0xf] }
 0x164   :  { %v2003_v48 = vadd.f32 %v6983_v42, %v1990_v36  ;;  %v7094_v49 = vpack.c.bf16 %v2240_v33, %v2240_v33  ;;  %v5072_v42 = vld [vmem:[%s7535_s3 + $0x154] sm:$0xf0]  ;;  %v4340_v36 = vor.u32 %v5033_v12, %v4337_v21  ;;  %v4456_v57 = vor.u32 %v5064_v56, %v4455_v31  ;;  %v4489_v4 = vld [vmem:[%s7535_s3 + $0x158] sm:$0xf0]  ;;  %v5067_v44 = vld [vmem:[%s7535_s3 + $0x134] sm:$0xf] }
 0x165   :  { %v4488_v3 = vor.u32 %v5072_v42, %v4487_v15  ;;  %v5073_v42 = vld [vmem:[%s7535_s3 + $0x164] sm:$0xf]  ;;  %v4449_v21 = vld [vmem:[%s7535_s3 + $0x108] sm:$0xf0]  ;;  %v4559_v31 = vld [vmem:[%s7535_s3 + $0x1e0] sm:$0xf] }
 0x166   :  { %2641 = vmatpush.bf16.msrb.mxu0 %v4352_v52  ;;  %2654 = vmatpush.bf16.msrb.mxu1 %v4416_v53  ;;  %v4436_v52 = vor.u32 %v5057_v41, %v4433_v46  ;;  %v5039_v53 = vld [vmem:[%s7535_s3 + $0x54] sm:$0xf]  ;;  %v4505_v46 = vld [vmem:[%s7535_s3 + $0x178] sm:$0xf0]  ;;  %v5061_v12 = vld [vmem:[%s7535_s3 + $0x104] sm:$0xf] }
 0x167   :  { %2221 = vmatpush.bf16.msra.mxu2 %v4076_v6  ;;  %2234 = vmatpush.bf16.msra.mxu3 %v4204_v7  ;;  %v4364_v7 = vor.u32 %v5039_v53, %v4361_v60  ;;  %v5075_v41 = vld [vmem:[%s7535_s3 + $0x174] sm:$0xf]  ;;  %v4448_v53 = vor.u32 %v5062_v40, %v4447_v58  ;;  %v5086_v58 = vld [vmem:[%s7535_s3 + $0x1c4] sm:$0xf0] }
 0x168   :  { %v4508_v15 = vor.u32 %v5075_v41, %v4505_v46 }
 0x16a   :  { %2642 = vmatpush.bf16.msrb.mxu0 %v4344_v8  ;;  %2655 = vmatpush.bf16.msrb.mxu1 %v4408_v13  ;;  %v4428_v8 = vor.u32 %v5055_v63, %v4425_v0  ;;  %v5037_v13 = vld [vmem:[%s7535_s3 + $0x44] sm:$0xf] }
 0x16b   :  { %2222 = vmatmul.bf16.vlgmr.msra.gmra.mxu2 %v5914_v1  ;;  %2235 = vmatmul.bf16.vlgmr.msra.gmra.mxu3 %v5916_v2  ;;  %v4383_v1 = vld [vmem:[%s7535_s3 + $0x80] sm:$0xf]  ;;  %v5046_v2 = vld [vmem:[%s7535_s3 + $0x84] sm:$0xf0] }
 0x16c   :  { %v4384_v22 = vor.u32 %v5046_v2, %v4383_v1  ;;  %2664 = vmatpush.bf16.msrb.mxu2 %v4504_v32  ;;  %v4348_v1 = vor.u32 %v5035_v35, %v4345_v26  ;;  %v4412_v2 = vor.u32 %v5051_v27, %v4409_v28  ;;  %v4465_v35 = vld [vmem:[%s7535_s3 + $0x128] sm:$0xf0]  ;;  %v5063_v26 = vld [vmem:[%s7535_s3 + $0x114] sm:$0xf]  ;;  %v4457_v27 = vld [vmem:[%s7535_s3 + $0x118] sm:$0xf0] }
 0x16d   :  { %v4567_v28 = vld [vmem:[%s7535_s3 + $0x1f0] sm:$0xf] }
 0x16e   :  { %2643 = vmatpush.bf16.msrb.mxu0 %v4336_v23  ;;  %2656 = vmatpush.bf16.msrb.mxu1 %v4400_v24  ;;  %v4356_v24 = vor.u32 %v5037_v13, %v4353_v14  ;;  %v4481_v13 = vld [vmem:[%s7535_s3 + $0x148] sm:$0xf0] }
 0x16f   :  { %v2015_v50 = vpop.f32.mrf.mxu2  ;;  %v2028_v51 = vpop.f32.mrf.mxu3 }
 0x170   :  { %v2016_v59 = vadd.f32 %v2015_v50, %v2003_v48  ;;  %2665 = vmatpush.bf16.msrb.mxu2 %v4496_v47  ;;  %v5029_v50 = vld [vmem:[%s7535_s3 + $0x4] sm:$0xf] }
 0x172   :  { %2644 = vmatpush.bf16.msrb.mxu0 %v4328_v29  ;;  %2657 = vmatpush.bf16.msrb.mxu1 %v4392_v9  ;;  %v2029_v6 = vadd.f32 %v2028_v51, %v2016_v59  ;;  %v4472_v29 = vor.u32 %v5068_v11, %v4471_v45  ;;  %v4463_v9 = vld [vmem:[%s7535_s3 + $0x120] sm:$0xf]  ;;  %v4321_v51 = vld [vmem:[%s7535_s3 + $0x8] sm:$0xf0] }
 0x173   :  { %v4464_v54 = vor.u32 %v5066_v10, %v4463_v9  ;;  %v4497_v59 = vld [vmem:[%s7535_s3 + $0x168] sm:$0xf0]  ;;  %v4324_v60 = vor.u32 %v5029_v50, %v4321_v51 }
 0x174   :  { %v2241_v16 = vmax.f32 %v2029_v6, 0.0  ;;  %2666 = vmatpush.bf16.msrb.mxu2 %v4488_v3  ;;  %v4500_v0 = vor.u32 %v5073_v42, %v4497_v59  ;;  %v5071_v3 = vld [vmem:[%s7535_s3 + $0x154] sm:$0xf]  ;;  %v4527_v42 = vld [vmem:[%s7535_s3 + $0x1a0] sm:$0xf] }
 0x175   :  { %v5082_v59 = vld [vmem:[%s7535_s3 + $0x1a4] sm:$0xf0] }
 0x176   :  { %2645 = vmatpush.bf16.msrb.mxu0 %v4320_v43  ;;  %2658 = vmatpush.bf16.msrb.mxu1 %v4384_v22  ;;  %v7133_v18 = vpack.c.bf16 %v2241_v16, %v2241_v16  ;;  %v7135_v19 = vpop.f32.mrf.mxu0  ;;  %v7137_v20 = vpop.f32.mrf.mxu1  ;;  %v4404_v43 = vor.u32 %v5049_v55, %v4401_v30  ;;  %v5031_v22 = vld [vmem:[%s7535_s3 + $0x14] sm:$0xf]  ;;  %v4452_v30 = vor.u32 %v5061_v12, %v4449_v21 }
 0x177   :  { %v2017_v37 = vpop.f32.mrf.mxu2  ;;  %v2030_v23 = vpop.f32.mrf.mxu3 }
 0x178   :  { %2667 = vmatpush.bf16.msrb.mxu2 %v4480_v17  ;;  %v7247_v23 = vld [vmem:[%s7541_s9 + $0x8] sm:$0xf] }
 0x179   :  { %2646 = vmatmul.bf16.vlgmr.msrb.gmra.mxu0 %v7094_v49  ;;  %2659 = vmatmul.bf16.vlgmr.msrb.gmra.mxu1 %v7133_v18  ;;  %v539_v21 = vperm.slane %v7247_v23, 3 }
 0x17a   :  { %2690 = vmatpush.bf16.msra.mxu0 %v4380_v61  ;;  %2703 = vmatpush.bf16.msra.mxu1 %v4444_v38  ;;  %v4329_v61 = vld [vmem:[%s7535_s3 + $0x18] sm:$0xf0]  ;;  %v5047_v38 = vld [vmem:[%s7535_s3 + $0x94] sm:$0xf] }
 0x17b   :  { %v4332_v47 = vor.u32 %v5031_v22, %v4329_v61  ;;  %v4396_v48 = vor.u32 %v5047_v38, %v4393_v39 }
 0x17c   :  { %2668 = vmatpush.bf16.msrb.mxu2 %v4472_v29  ;;  %v5092_v29 = vld [vmem:[%s7535_s3 + $0x1f4] sm:$0xf0] }
 0x17e   :  { %2691 = vmatpush.bf16.msra.mxu0 %v4372_v62  ;;  %2704 = vmatpush.bf16.msra.mxu1 %v4436_v52  ;;  %v2043_v32 = vpop.f32.mrf.mxu0  ;;  %v2056_v33 = vpop.f32.mrf.mxu1  ;;  %v5045_v62 = vld [vmem:[%s7535_s3 + $0x84] sm:$0xf]  ;;  %v4385_v52 = vld [vmem:[%s7535_s3 + $0x88] sm:$0xf0] }
 0x17f   :  { %v4388_v63 = vor.u32 %v5045_v62, %v4385_v52  ;;  %v4551_v33 = vld [vmem:[%s7535_s3 + $0x1d0] sm:$0xf] }
 0x180   :  { %2669 = vmatpush.bf16.msrb.mxu2 %v4464_v54 }
 0x182   :  { %2692 = vmatpush.bf16.msra.mxu0 %v4364_v7  ;;  %2705 = vmatpush.bf16.msra.mxu1 %v4428_v8  ;;  %v4492_v7 = vor.u32 %v5071_v3, %v4489_v4  ;;  %v5069_v8 = vld [vmem:[%s7535_s3 + $0x144] sm:$0xf]  ;;  %v4511_v4 = vld [vmem:[%s7535_s3 + $0x180] sm:$0xf] }
 0x183   :  { %v4484_v14 = vor.u32 %v5069_v8, %v4481_v13  ;;  %v5091_v8 = vld [vmem:[%s7535_s3 + $0x1f4] sm:$0xf]  ;;  %v4569_v13 = vld [vmem:[%s7535_s3 + $0x1f8] sm:$0xf0] }
 0x184   :  { %2670 = vmatpush.bf16.msrb.mxu2 %v4456_v57  ;;  %v4543_v57 = vld [vmem:[%s7535_s3 + $0x1c0] sm:$0xf] }
 0x185   :  { %v4544_v40 = vor.u32 %v5086_v58, %v4543_v57 }
 0x186   :  { %2693 = vmatpush.bf16.msra.mxu0 %v4356_v24  ;;  %2706 = vmatpush.bf16.msra.mxu1 %v4420_v25  ;;  %v538_v24 = vperm.slane %v7247_v23, 2  ;;  %v5065_v25 = vld [vmem:[%s7535_s3 + $0x124] sm:$0xf] }
 0x187   :  { %v4468_v45 = vor.u32 %v5065_v25, %v4465_v35  ;;  %v5085_v35 = vld [vmem:[%s7535_s3 + $0x1c4] sm:$0xf] }
 0x188   :  { %2671 = vmatpush.bf16.msrb.mxu2 %v4448_v53  ;;  %v2042_v11 = vadd.f32 %v7135_v19, %v538_v24  ;;  %v4460_v19 = vor.u32 %v5063_v26, %v4457_v27  ;;  %v5083_v26 = vld [vmem:[%s7535_s3 + $0x1b4] sm:$0xf]  ;;  %v4537_v27 = vld [vmem:[%s7535_s3 + $0x1b8] sm:$0xf0] }
 0x18a   :  { %2694 = vmatpush.bf16.msra.mxu0 %v4348_v1  ;;  %2707 = vmatpush.bf16.msra.mxu1 %v4412_v2  ;;  %v4568_v1 = vor.u32 %v5092_v29, %v4567_v28  ;;  %v2055_v2 = vadd.f32 %v7137_v20, %v2042_v11  ;;  %v5090_v20 = vld [vmem:[%s7535_s3 + $0x1e4] sm:$0xf0]  ;;  %v4540_v28 = vor.u32 %v5083_v26, %v4537_v27  ;;  %v5104_v26 = vld [vmem:[%s7536_s4 + $0x58] sm:$0xff]  ;;  %v5103_v27 = vld [vmem:[%s7536_s4 + $0x50] sm:$0xff] }
 0x18b   :  { %v4560_v56 = vor.u32 %v5090_v20, %v4559_v31  ;;  %v5077_v31 = vld [vmem:[%s7535_s3 + $0x184] sm:$0xf] }
 0x18c   :  { %2716 = vmatpush.bf16.msra.mxu2 %v4508_v15  ;;  %2677 = vmatpush.bf16.msrb.mxu3 %v4568_v1  ;;  %v4529_v1 = vld [vmem:[%s7535_s3 + $0x1a8] sm:$0xf0] }
 0x18e   :  { %2695 = vmatpush.bf16.msra.mxu0 %v4340_v36  ;;  %2708 = vmatpush.bf16.msra.mxu1 %v4404_v43  ;;  %v5088_v36 = vld [vmem:[%s7535_s3 + $0x1d4] sm:$0xf0] }
 0x18f   :  { %v2067_v5 = vpop.f32.mrf.mxu2  ;;  %v2080_v6 = vpop.f32.mrf.mxu3  ;;  %v4552_v22 = vor.u32 %v5088_v36, %v4551_v33 }
 0x190   :  { %2717 = vmatpush.bf16.msra.mxu2 %v4500_v0  ;;  %v2068_v55 = vadd.f32 %v2067_v5, %v2055_v2  ;;  %2678 = vmatpush.bf16.msrb.mxu3 %v4560_v56  ;;  %v5080_v0 = vld [vmem:[%s7535_s3 + $0x194] sm:$0xf0]  ;;  %v5078_v5 = vld [vmem:[%s7535_s3 + $0x184] sm:$0xf0]  ;;  %v4513_v56 = vld [vmem:[%s7535_s3 + $0x188] sm:$0xf0] }
 0x191   :  { %v4516_v33 = vor.u32 %v5077_v31, %v4513_v56 }
 0x192   :  { %2696 = vmatpush.bf16.msra.mxu0 %v4332_v47  ;;  %2709 = vmatpush.bf16.msra.mxu1 %v4396_v48  ;;  %v2081_v54 = vadd.f32 %v2080_v6, %v2068_v55  ;;  %v4535_v47 = vld [vmem:[%s7535_s3 + $0x1b0] sm:$0xf]  ;;  %v5084_v48 = vld [vmem:[%s7535_s3 + $0x1b4] sm:$0xf0] }
 0x193   :  { %v4536_v52 = vor.u32 %v5084_v48, %v4535_v47 }
 0x194   :  { %2718 = vmatpush.bf16.msra.mxu2 %v4492_v7  ;;  %2679 = vmatpush.bf16.msrb.mxu3 %v4552_v22 }
 0x196   :  { %2697 = vmatpush.bf16.msra.mxu0 %v4324_v60  ;;  %2710 = vmatpush.bf16.msra.mxu1 %v4388_v63  ;;  %v2093_v16 = vpop.f32.mrf.mxu0  ;;  %v2106_v34 = vpop.f32.mrf.mxu1  ;;  %v4528_v60 = vor.u32 %v5082_v59, %v4527_v42  ;;  %v4519_v63 = vld [vmem:[%s7535_s3 + $0x190] sm:$0xf] }
 0x197   :  { %v2069_v17 = vpop.f32.mrf.mxu2  ;;  %v2094_v32 = vadd.f32 %v2093_v16, %v2081_v54  ;;  %v4520_v3 = vor.u32 %v5080_v0, %v4519_v63  ;;  %v4572_v16 = vor.u32 %v5091_v8, %v4569_v13  ;;  %v4521_v54 = vld [vmem:[%s7535_s3 + $0x198] sm:$0xf0]  ;;  %v5099_v13 = vld [vmem:[%s7536_s4 + $0x30] sm:$0xff] }
 0x198   :  { %2719 = vmatpush.bf16.msra.mxu2 %v4484_v14  ;;  %2680 = vmatpush.bf16.msrb.mxu3 %v4544_v40  ;;  %v4512_v14 = vor.u32 %v5078_v5, %v4511_v4  ;;  %v5087_v17 = vld [vmem:[%s7535_s3 + $0x1d4] sm:$0xf]  ;;  %v5108_v8 = vld [vmem:[%s7536_s4 + $0x78] sm:$0xff] }
 0x199   :  { %2698 = vmatmul.bf16.vlgmr.msra.gmra.mxu0 %v7094_v49  ;;  %2711 = vmatmul.bf16.vlgmr.msra.gmra.mxu1 %v7133_v18  ;;  %v4473_v49 = vld [vmem:[%s7535_s3 + $0x138] sm:$0xf0]  ;;  %v2082_v18 = vpop.f32.mrf.mxu3  ;;  %v2107_v43 = vadd.f32 %v2106_v34, %v2094_v32  ;;  %v5089_v34 = vld [vmem:[%s7535_s3 + $0x1e4] sm:$0xf] }
 0x19a   :  { %v4476_v37 = vor.u32 %v5067_v44, %v4473_v49  ;;  %v4561_v44 = vld [vmem:[%s7535_s3 + $0x1e8] sm:$0xf0]  ;;  %v4553_v18 = vld [vmem:[%s7535_s3 + $0x1d8] sm:$0xf0]  ;;  %2891 = vmatpush.bf16.msrb.mxu1 %v5108_v8 }
 0x19b   :  { %v4564_v49 = vor.u32 %v5089_v34, %v4561_v44  ;;  %v5097_v44 = vld [vmem:[%s7536_s4 + $0x20] sm:$0xff] }
 0x19c   :  { %2720 = vmatpush.bf16.msra.mxu2 %v4476_v37  ;;  %2681 = vmatpush.bf16.msrb.mxu3 %v4536_v52  ;;  %v4556_v37 = vor.u32 %v5087_v17, %v4553_v18  ;;  %v5095_v18 = vld [vmem:[%s7536_s4 + $0x10] sm:$0xff] }
 0x19e   :  { %v2095_v9 = vpop.f32.mrf.mxu0  ;;  %v2108_v10 = vpop.f32.mrf.mxu1 }
 0x19f   :  { %v5081_v10 = vld [vmem:[%s7535_s3 + $0x1a4] sm:$0xf] }
 0x1a0   :  { %2721 = vmatpush.bf16.msra.mxu2 %v4468_v45  ;;  %2682 = vmatpush.bf16.msrb.mxu3 %v4528_v60  ;;  %v4545_v45 = vld [vmem:[%s7535_s3 + $0x1c8] sm:$0xf0]  ;;  %v4532_v12 = vor.u32 %v5081_v10, %v4529_v1  ;;  %v5115_v10 = vld [vmem:[%s7537_s5 + $0x30] sm:$0xff] }
 0x1a1   :  { %v4548_v11 = vor.u32 %v5085_v35, %v4545_v45  ;;  %v5106_v35 = vld [vmem:[%s7536_s4 + $0x68] sm:$0xff]  ;;  %v5093_v45 = vld [vmem:[%s7536_s4] sm:$0xff] }
 0x1a4   :  { %2722 = vmatpush.bf16.msra.mxu2 %v4460_v19  ;;  %2683 = vmatpush.bf16.msrb.mxu3 %v4520_v3 }
 0x1a8   :  { %2723 = vmatpush.bf16.msra.mxu2 %v4452_v30  ;;  %2684 = vmatpush.bf16.msrb.mxu3 %v4512_v14  ;;  %v5079_v30 = vld [vmem:[%s7535_s3 + $0x194] sm:$0xf] }
 0x1a9   :  { %v4524_v20 = vor.u32 %v5079_v30, %v4521_v54  ;;  %v5107_v14 = vld [vmem:[%s7536_s4 + $0x70] sm:$0xff] }
 0x1aa   :  { %2892 = vmatpush.bf16.msrb.mxu1 %v5107_v14 }
 0x1ac   :  { %2729 = vmatpush.bf16.msra.mxu3 %v4572_v16  ;;  %v5098_v16 = vld [vmem:[%s7536_s4 + $0x28] sm:$0xff] }
 0x1ae   :  { %2893 = vmatpush.bf16.msrb.mxu1 %v5106_v35  ;;  %v5144_v35 = vld [vmem:[%s7541_s9 + $0x10] ss:$0 sm:$0xff] }
 0x1af   :  { %v2119_v61 = vpop.f32.mrf.mxu2  ;;  %v2132_v38 = vpop.f32.mrf.mxu3 }
 0x1b0   :  { %v2120_v39 = vadd.f32 %v2119_v61, %v2107_v43  ;;  %2730 = vmatpush.bf16.msra.mxu3 %v4564_v49  ;;  %v5096_v49 = vld [vmem:[%s7536_s4 + $0x18] sm:$0xff] }
 0x1b2   :  { %v2133_v41 = vadd.f32 %v2132_v38, %v2120_v39 }
 0x1b4   :  { %v2242_v46 = vmax.f32 %v2133_v41, 0.0  ;;  %2731 = vmatpush.bf16.msra.mxu3 %v4556_v37 }
 0x1b6   :  { %v2311_v50 = vpack.c.bf16 %v2242_v46, %v2242_v46  ;;  %v2145_v51 = vpop.f32.mrf.mxu0  ;;  %v2158_v62 = vpop.f32.mrf.mxu1  ;;  %v2308_v46 = vld [vmem:[%s7541_s9 + $0xc] sm:$0x3] }
 0x1b7   :  { %v2121_v53 = vpop.f32.mrf.mxu2  ;;  %v2134_v15 = vpop.f32.mrf.mxu3  ;;  %v2146_v55 = vadd.f32 %v2145_v51, %v539_v21  ;;  %v2314_v52 = vperm.slane %v2308_v46, 0  ;;  %v2315_v60 = vperm.slane %v2308_v46, 1 }
 0x1b8   :  { %2672 = vmatmul.bf16.vlgmr.msrb.gmra.mxu2 %v2311_v50  ;;  %2732 = vmatpush.bf16.msra.mxu3 %v4548_v11  ;;  %v5105_v11 = vld [vmem:[%s7536_s4 + $0x60] sm:$0xff] }
 0x1b9   :  { %v2159_v36 = vadd.f32 %v2158_v62, %v2146_v55  ;;  %2894 = vmatpush.bf16.msrb.mxu1 %v5105_v11 }
 0x1bc   :  { %2733 = vmatpush.bf16.msra.mxu3 %v4540_v28  ;;  %v5102_v28 = vld [vmem:[%s7536_s4 + $0x48] sm:$0xff] }
 0x1bd   :  { %2895 = vmatpush.bf16.msrb.mxu1 %v5104_v26 }
 0x1be   :  { %v2147_v6 = vpop.f32.mrf.mxu0  ;;  %v2160_v7 = vpop.f32.mrf.mxu1 }
 0x1bf   :  { %v5100_v7 = vld [vmem:[%s7536_s4 + $0x38] sm:$0xff] }
 0x1c0   :  { %2734 = vmatpush.bf16.msra.mxu3 %v4532_v12  ;;  %2878 = vmatpush.bf16.msrb.mxu0 %v5100_v7 }
 0x1c1   :  { %2896 = vmatpush.bf16.msrb.mxu1 %v5103_v27 }
 0x1c4   :  { %2735 = vmatpush.bf16.msra.mxu3 %v4524_v20  ;;  %2879 = vmatpush.bf16.msrb.mxu0 %v5099_v13 }
 0x1c5   :  { %2897 = vmatpush.bf16.msrb.mxu1 %v5102_v28 }
 0x1c8   :  { %2724 = vmatmul.bf16.vlgmr.msra.gmra.mxu2 %v2311_v50  ;;  %2736 = vmatpush.bf16.msra.mxu3 %v4516_v33  ;;  %v5113_v33 = vld [vmem:[%s7537_s5 + $0x20] sm:$0xff] }
 0x1c9   :  { %2880 = vmatpush.bf16.msrb.mxu0 %v5098_v16 }
 0x1cd   :  { %2881 = vmatpush.bf16.msrb.mxu0 %v5097_v44  ;;  %v5125_v44 = vld [vmem:[%s7539_s7] sm:$0xff] }
 0x1cf   :  { %v2171_v24 = vpop.f32.mrf.mxu2  ;;  %v2184_v25 = vpop.f32.mrf.mxu3 }
 0x1d0   :  { %v2172_v43 = vadd.f32 %v2171_v24, %v2159_v36  ;;  %v5112_v36 = vld [vmem:[%s7537_s5 + $0x18] sm:$0xff] }
 0x1d1   :  { %2882 = vmatpush.bf16.msrb.mxu0 %v5096_v49  ;;  %v5140_v49 = vld [vmem:[%s7540_s8 + $0x38] sm:$0xff] }
 0x1d2   :  { %v2185_v22 = vadd.f32 %v2184_v25, %v2172_v43  ;;  %v5094_v25 = vld [vmem:[%s7536_s4 + $0x8] sm:$0xff]  ;;  %v5111_v43 = vld [vmem:[%s7537_s5 + $0x10] sm:$0xff] }
 0x1d5   :  { %2883 = vmatpush.bf16.msrb.mxu0 %v5095_v18  ;;  %v5138_v18 = vld [vmem:[%s7540_s8 + $0x28] sm:$0xff] }
 0x1d6   :  { %v2197_v29 = vpop.f32.mrf.mxu0  ;;  %v2210_v9 = vpop.f32.mrf.mxu1 }
 0x1d7   :  { %v2173_v19 = vpop.f32.mrf.mxu2  ;;  %v2186_v2 = vpop.f32.mrf.mxu3  ;;  %v2198_v61 = vadd.f32 %v2197_v29, %v2185_v22  ;;  %v5101_v29 = vld [vmem:[%s7536_s4 + $0x40] sm:$0xff]  ;;  %v5110_v22 = vld [vmem:[%s7537_s5 + $0x8] sm:$0xff] }
 0x1d8   :  { %2898 = vmatpush.bf16.msrb.mxu1 %v5101_v29  ;;  %v5134_v29 = vld [vmem:[%s7540_s8 + $0x8] sm:$0xff] }
 0x1d9   :  { %v2211_v38 = vadd.f32 %v2210_v9, %v2198_v61  ;;  %2884 = vmatpush.bf16.msrb.mxu0 %v5094_v25  ;;  %v5116_v9 = vld [vmem:[%s7537_s5 + $0x38] sm:$0xff]  ;;  %v5109_v61 = vld [vmem:[%s7537_s5] sm:$0xff]  ;;  %v5135_v25 = vld [vmem:[%s7540_s8 + $0x10] sm:$0xff] }
 0x1da   :  { %2974 = vmatpush.bf16.msrb.mxu2 %v5116_v9  ;;  %v5133_v9 = vld [vmem:[%s7540_s8] sm:$0xff] }
 0x1dc   :  { %3223 = vmatpush.bf16.msra.mxu1 %v5140_v49 }
 0x1dd   :  { %2885 = vmatpush.bf16.msrb.mxu0 %v5093_v45 }
 0x1de   :  { %v2199_v23 = vpop.f32.mrf.mxu0  ;;  %v2212_v32 = vpop.f32.mrf.mxu1  ;;  %2975 = vmatpush.bf16.msrb.mxu2 %v5115_v10  ;;  %v5145_v10 = vld [vmem:[%s7541_s9 + $0x11] ss:$0 sm:$0xff] }
 0x1df   :  { %v5114_v32 = vld [vmem:[%s7537_s5 + $0x28] sm:$0xff] }
 0x1e2   :  { %2976 = vmatpush.bf16.msrb.mxu2 %v5114_v32 }
 0x1e6   :  { %2977 = vmatpush.bf16.msrb.mxu2 %v5113_v33 }
 0x1ea   :  { %2978 = vmatpush.bf16.msrb.mxu2 %v5112_v36 }
 0x1ee   :  { %v2223_v39 = vpop.f32.mrf.mxu2  ;;  %v2236_v57 = vpop.f32.mrf.mxu3  ;;  %2979 = vmatpush.bf16.msrb.mxu2 %v5111_v43 }
 0x1ef   :  { %v2224_v58 = vadd.f32 %v2223_v39, %v2211_v38  ;;  %v5124_v38 = vld [vmem:[%s7538_s6 + $0x38] sm:$0xff]  ;;  %v5123_v39 = vld [vmem:[%s7538_s6 + $0x30] sm:$0xff] }
 0x1f1   :  { %v2237_v40 = vadd.f32 %v2236_v57, %v2224_v58  ;;  %v5122_v57 = vld [vmem:[%s7538_s6 + $0x28] sm:$0xff] }
 0x1f2   :  { %2980 = vmatpush.bf16.msrb.mxu2 %v5110_v22 }
 0x1f3   :  { %v2243_v41 = vmax.f32 %v2237_v40, 0.0  ;;  %v5121_v40 = vld [vmem:[%s7538_s6 + $0x20] sm:$0xff] }
 0x1f5   :  { %v2312_v47 = vpack.c.bf16 %v2243_v41, %v2243_v41  ;;  %v5120_v41 = vld [vmem:[%s7538_s6 + $0x18] sm:$0xff] }
 0x1f6   :  { %v2647_v48 = vpop.f32.mrf.mxu0  ;;  %v2225_v50 = vpop.f32.mrf.mxu2  ;;  %2981 = vmatpush.bf16.msrb.mxu2 %v5109_v61 }
 0x1f7   :  { %v2238_v51 = vpop.f32.mrf.mxu3  ;;  %2685 = vmatmul.bf16.vlgmr.msrb.gmra.mxu3 %v2312_v47  ;;  %v2648_v62 = vadd.f32 %v2647_v48, %v2314_v52  ;;  %v2660_v53 = vpop.f32.mrf.mxu1  ;;  %v5142_v48 = vld [vmem:[%s7541_s9 + $0xe] ss:$0 sm:$0xff] }
 0x1f8   :  { %3057 = vmatpush.bf16.msrb.mxu3 %v5124_v38 }
 0x1f9   :  { %v2661_v42 = vadd.f32 %v2660_v53, %v2648_v62 }
 0x1fc   :  { %3058 = vmatpush.bf16.msrb.mxu3 %v5123_v39 }
 0x1fe   :  { %v2649_v15 = vpop.f32.mrf.mxu0 }
 0x1ff   :  { %v2662_v59 = vpop.f32.mrf.mxu1 }
 0x200   :  { %3059 = vmatpush.bf16.msrb.mxu3 %v5122_v57  ;;  %v5117_v59 = vld [vmem:[%s7538_s6] sm:$0xff] }
 0x204   :  { %3060 = vmatpush.bf16.msrb.mxu3 %v5121_v40 }
 0x207   :  { %2737 = vmatmul.bf16.vlgmr.msra.gmra.mxu3 %v2312_v47  ;;  %v5119_v47 = vld [vmem:[%s7538_s6 + $0x10] sm:$0xff] }
 0x208   :  { %3061 = vmatpush.bf16.msrb.mxu3 %v5120_v41 }
 0x20c   :  { %3062 = vmatpush.bf16.msrb.mxu3 %v5119_v47 }
 0x216   :  { %v2699_v63 = vpop.f32.mrf.mxu0  ;;  %v2712_v0 = vpop.f32.mrf.mxu1 }
 0x217   :  { %v2700_v3 = vadd.f32 %v2699_v63, %v2315_v60  ;;  %v5132_v60 = vld [vmem:[%s7539_s7 + $0x38] sm:$0xff]  ;;  %v5131_v63 = vld [vmem:[%s7539_s7 + $0x30] sm:$0xff] }
 0x218   :  { %3140 = vmatpush.bf16.msra.mxu0 %v5132_v60 }
 0x219   :  { %v2713_v4 = vadd.f32 %v2712_v0, %v2700_v3  ;;  %v5130_v0 = vld [vmem:[%s7539_s7 + $0x28] sm:$0xff]  ;;  %v5129_v3 = vld [vmem:[%s7539_s7 + $0x20] sm:$0xff] }
 0x21c   :  { %3141 = vmatpush.bf16.msra.mxu0 %v5131_v63 }
 0x21e   :  { %v2701_v5 = vpop.f32.mrf.mxu0  ;;  %v2714_v6 = vpop.f32.mrf.mxu1 }
 0x21f   :  { %v5127_v5 = vld [vmem:[%s7539_s7 + $0x10] sm:$0xff]  ;;  %v5143_v6 = vld [vmem:[%s7541_s9 + $0xf] ss:$0 sm:$0xff] }
 0x220   :  { %3142 = vmatpush.bf16.msra.mxu0 %v5130_v0 }
 0x224   :  { %3143 = vmatpush.bf16.msra.mxu0 %v5129_v3 }
 0x23b   :  { %v2673_v34 = vpop.f32.mrf.mxu2 }
 0x23c   :  { %v2674_v1 = vadd.f32 %v2673_v34, %v2661_v42  ;;  %v5118_v42 = vld [vmem:[%s7538_s6 + $0x8] sm:$0xff] }
 0x23d   :  { %3063 = vmatpush.bf16.msrb.mxu3 %v5118_v42  ;;  %v5126_v34 = vld [vmem:[%s7539_s7 + $0x8] sm:$0xff] }
 0x241   :  { %3064 = vmatpush.bf16.msrb.mxu3 %v5117_v59 }
 0x243   :  { %v2675_v17 = vpop.f32.mrf.mxu2 }
 0x244   :  { %v5139_v17 = vld [vmem:[%s7540_s8 + $0x30] sm:$0xff] }
 0x245   :  { %3224 = vmatpush.bf16.msra.mxu1 %v5139_v17 }
 0x249   :  { %3225 = vmatpush.bf16.msra.mxu1 %v5138_v18 }
 0x24b   :  { %v2725_v37 = vpop.f32.mrf.mxu2 }
 0x24c   :  { %v2726_v30 = vadd.f32 %v2725_v37, %v2713_v4  ;;  %v5128_v4 = vld [vmem:[%s7539_s7 + $0x18] sm:$0xff]  ;;  %v5137_v37 = vld [vmem:[%s7540_s8 + $0x20] sm:$0xff] }
 0x24d   :  { %3144 = vmatpush.bf16.msra.mxu0 %v5128_v4  ;;  %3226 = vmatpush.bf16.msra.mxu1 %v5137_v37 }
 0x251   :  { %3145 = vmatpush.bf16.msra.mxu0 %v5127_v5 }
 0x253   :  { %v2727_v24 = vpop.f32.mrf.mxu2 }
 0x254   :  { %v5136_v24 = vld [vmem:[%s7540_s8 + $0x18] sm:$0xff]  ;;  %s3244_s8 = sshll.u32 %s7542_s10, 4  ;;  %s3245_s8 = int_to_ptr.hbm [resolvable:$true] %s3244_s8 }
 0x255   :  { %3146 = vmatpush.bf16.msra.mxu0 %v5126_v34  ;;  %3227 = vmatpush.bf16.msra.mxu1 %v5136_v24 }
 0x259   :  { %3147 = vmatpush.bf16.msra.mxu0 %v5125_v44  ;;  %3228 = vmatpush.bf16.msra.mxu1 %v5135_v25 }
 0x25d   :  { %3229 = vmatpush.bf16.msra.mxu1 %v5134_v29 }
 0x261   :  { %3230 = vmatpush.bf16.msra.mxu1 %v5133_v9 }
 0x27a   :  { %v2686_v19 = vpop.f32.mrf.mxu3 }
 0x27b   :  { %v2687_v2 = vadd.f32 %v2686_v19, %v2674_v1 }
 0x27d   :  { %v2742_v12 = vmax.f32 %v2687_v2, 0.0 }
 0x27f   :  { %v2777_v21 = vpack.c.bf16 %v2742_v12, %v2742_v12 }
 0x281   :  { %2886 = vmatmul.bf16.vlgmr.msrb.gmra.mxu0 %v2777_v21 }
 0x282   :  { %v2688_v55 = vpop.f32.mrf.mxu3 }
 0x283   :  { %v5146_v55 = vld [vmem:[%s7541_s9 + $0x12] ss:$0 sm:$0xff] }
 0x28a   :  { %v2738_v54 = vpop.f32.mrf.mxu3 }
 0x28b   :  { %v2739_v31 = vadd.f32 %v2738_v54, %v2726_v30 }
 0x28d   :  { %v2743_v20 = vmax.f32 %v2739_v31, 0.0 }
 0x28f   :  { %v2778_v56 = vpack.c.bf16 %v2743_v20, %v2743_v20 }
 0x291   :  { %2899 = vmatmul.bf16.vlgmr.msrb.gmra.mxu1 %v2778_v56 }
 0x292   :  { %v2740_v23 = vpop.f32.mrf.mxu3 }
 0x2fe   :  { %v2887_v58 = vpop.f32.mrf.mxu0 }
 0x2ff   :  { %v2888_v50 = vadd.f32 %v5142_v48, %v2887_v58 }
 0x306   :  { %v2889_v46 = vpop.f32.mrf.mxu0 }
 0x30e   :  { %v2900_v51 = vpop.f32.mrf.mxu1 }
 0x30f   :  { %v2901_v52 = vadd.f32 %v2900_v51, %v2888_v50 }
 0x311   :  { %v2904_v62 = vmax.f32 %v2901_v52, 0.0 }
 0x313   :  { %v2922_v53 = vpack.c.bf16 %v2904_v62, %v2904_v62 }
 0x315   :  { %2982 = vmatmul.bf16.vlgmr.msrb.gmra.mxu2 %v2922_v53 }
 0x316   :  { %v2902_v15 = vpop.f32.mrf.mxu1 }
 0x398   :  { %v2983_v7 = vpop.f32.mrf.mxu2 }
 0x399   :  { %v2984_v8 = vadd.f32 %v5143_v6, %v2983_v7 }
 0x39b   :  { %v2987_v13 = vmax.f32 %v2984_v8, 0.0 }
 0x39d   :  { %v3005_v14 = vpack.c.bf16 %v2987_v13, %v2987_v13 }
 0x39f   :  { %3065 = vmatmul.bf16.vlgmr.msrb.gmra.mxu3 %v3005_v14 }
 0x3a0   :  { %v2985_v16 = vpop.f32.mrf.mxu2 }
 0x422   :  { %v3066_v45 = vpop.f32.mrf.mxu3 }
 0x423   :  { %v3067_v11 = vadd.f32 %v5144_v35, %v3066_v45 }
 0x425   :  { %v3070_v26 = vmax.f32 %v3067_v11, 0.0 }
 0x427   :  { %v3088_v27 = vpack.c.bf16 %v3070_v26, %v3070_v26 }
 0x429   :  { %3148 = vmatmul.bf16.vlgmr.msra.gmra.mxu0 %v3088_v27 }
 0x42a   :  { %v3068_v28 = vpop.f32.mrf.mxu3 }
 0x4a6   :  { %v3149_v1 = vpop.f32.mrf.mxu0 }
 0x4a7   :  { %v3150_v19 = vadd.f32 %v5145_v10, %v3149_v1 }
 0x4a9   :  { %v3153_v2 = vmax.f32 %v3150_v19, 0.0 }
 0x4ab   :  { %v3171_v12 = vpack.c.bf16 %v3153_v2, %v3153_v2 }
 0x4ad   :  { %3231 = vmatmul.bf16.vlgmr.msra.gmra.mxu1 %v3171_v12 }
 0x4ae   :  { %v3151_v21 = vpop.f32.mrf.mxu0 }
 0x52a   :  { %v3232_v30 = vpop.f32.mrf.mxu1 }
 0x52b   :  { %v3233_v54 = vadd.f32 %v5146_v55, %v3232_v30 }
 0x52d   :  { %3236 = vst [vmem:[#allocation2] sm:$0xff] %v3233_v54 }
 0x52e   :  { %3247 = dma.vmem_to_hbm [thread:$0]  %s3243_s17, 128, %s3245_s8, [#allocation3]  }
 0x532   :  { %v3234_v31 = vpop.f32.mrf.mxu1 }
 0x533   :  { %5172 = dma.done.wait [#allocation3], 128  }
 0x534   :  { %5173 = vsyncadd [#allocation3], 4294967168 }
 0x535   :  { %3252 = vsyncpa [#allocation3], 1 }

</bundles_post_ra>
